<compile_context>
chip_gen: v6e
topology: v6e:2x2x1
jax: 0.10.0
libtpu: 0.0.40
codegen_flags: <defaults>
</compile_context>

<pallas_src>
import functools

import jax
import jax.numpy as jnp
from jax import lax
from jax.experimental import pallas as pl
from jax.experimental.pallas import tpu as pltpu

_BN_EPS = 1e-5
_MARGIN = 128  # lane-aligned zero margin around the padded-flat state buffer


def _round_up(v, m):
    return (v + m - 1) // m * m


def _recurrent_kernel(xext_ref, w_ref, gb_ref, mask_ref, o_ref, zext_ref,
                      *maybe_pt, wp, lp, inv_count, t, matmul_dtype):
    """Fused (t+1) x [conv3x3 -> train-mode BN -> ReLU] with residual re-adds.

    xext_ref : (Cp, MARGIN + Lp + MARGIN) f32  padded-flat input, zero halos/margins
    w_ref    : (Cp, 9*Cp) matmul_dtype         im2col weights, column = tap*Cp + ci
    gb_ref   : (Cp, 2) f32                     BN gamma (col 0) / beta (col 1)
    mask_ref : (1, Lp) f32                     1.0 at interior (valid) positions
    o_ref    : (Cp, Lp)                        output (halo/pad positions unmasked)
    zext_ref : (Cp, MARGIN + Lp + MARGIN) f32  VMEM state (conv input of steps 1..t)
    maybe_pt : optional (9*Cp, Lp) scratch     im2col patch matrix (packed path)
    """
    pt_ref = maybe_pt[0] if maybe_pt else None
    cpad = o_ref.shape[0]

    mask = mask_ref[...]            # (1, Lp), binary
    gamma = gb_ref[:, 0:1]          # (Cp, 1)
    beta = gb_ref[:, 1:2]           # (Cp, 1)

    def conv_bn_relu(src_ref, apply_mask):
        # ---- 3x3 conv as MXU matmul(s) over lane-shifted views ------------
        if pt_ref is not None:
            # Packed im2col: 9 sublane-aligned tap slabs -> one K=9*Cp dot.
            for kh in range(3):
                for kw in range(3):
                    tap = kh * 3 + kw
                    off = (kh - 1) * wp + (kw - 1)
                    pt_ref[pl.ds(tap * cpad, cpad), :] = (
                        src_ref[:, pl.ds(_MARGIN + off, lp)].astype(pt_ref.dtype))
            y = jnp.dot(w_ref[...], pt_ref[...],
                        preferred_element_type=jnp.float32)
        else:
            # Direct accumulation: 9 K=Cp dots, no (9*Cp, Lp) staging scratch.
            y = jnp.zeros((cpad, lp), jnp.float32)
            for kh in range(3):
                for kw in range(3):
                    tap = kh * 3 + kw
                    off = (kh - 1) * wp + (kw - 1)
                    view = src_ref[:, pl.ds(_MARGIN + off, lp)].astype(matmul_dtype)
                    y = y + jnp.dot(w_ref[:, pl.ds(tap * cpad, cpad)], view,
                                    preferred_element_type=jnp.float32)

        # ---- fused train-mode BN + ReLU epilogue (single pass over y) -----
        ym = y * mask                                         # (Cp, Lp)
        s1 = jnp.sum(ym, axis=1, keepdims=True)               # (Cp, 1)
        s2 = jnp.sum(ym * ym, axis=1, keepdims=True)          # mask is binary
        mean = s1 * inv_count
        var = jnp.maximum(s2 * inv_count - mean * mean, 0.0)
        a = gamma * lax.rsqrt(var + _BN_EPS)                  # (Cp, 1)
        b = beta - mean * a
        out = jnp.maximum(y * a + b, 0.0)
        # Re-zero halo/pad positions only when the result feeds the next step
        # (zero-padded conv input / residual add); the last result is sliced
        # back to the interior in the wrapper.
        return out * mask if apply_mask else out

    # Zero only the margins of the state buffer once; its interior is fully
    # rewritten before every use.
    zero_margin = jnp.zeros((cpad, _MARGIN), jnp.float32)
    zext_ref[:, pl.ds(0, _MARGIN)] = zero_margin
    zext_ref[:, pl.ds(_MARGIN + lp, _MARGIN)] = zero_margin

    # Step 0: x1 = conv_bn_relu(x), reading the input ref directly.
    # Conv bias omitted: train-mode BN's mean subtraction cancels it exactly.
    x1 = conv_bn_relu(xext_ref, apply_mask=True)

    # Steps 1..t: x1 = conv_bn_relu(x + x1).
    for step in range(t):
        zext_ref[:, pl.ds(_MARGIN, lp)] = xext_ref[:, pl.ds(_MARGIN, lp)] + x1
        x1 = conv_bn_relu(zext_ref, apply_mask=(step < t - 1))

    o_ref[...] = x1.astype(o_ref.dtype)


def recurrent_block(x_nchw, w_oihw, gamma, beta, t=2,
                    matmul_dtype=jnp.float32, pack_im2col=None):
    """Fused Recurrent_block forward.  x_nchw: (N,C,H,W); w_oihw: (C,C,3,3).

    pack_im2col: True  -> single K=9*C dot via a (9*Cp, Lp) VMEM scratch
                 False -> nine accumulating K=C dots, no staging scratch
                 None  -> auto (packed for small C, direct for large C).
    matmul_dtype: set jnp.bfloat16 on v6e/v7x for production channel counts.
    """
    assert t >= 1
    n, c, h, w = x_nchw.shape
    hp, wp = h + 2, w + 2
    l_valid = n * hp * wp
    lp = _round_up(l_valid, 128)        # lane-dense flat spatial length
    cpad = _round_up(c, 8)              # sublane-dense channel count
    lext = lp + 2 * _MARGIN
    if pack_im2col is None:
        pack_im2col = c <= 64

    # ---- one-time layout glue (tiny) -------------------------------------
    xpad = jnp.pad(x_nchw.astype(jnp.float32), ((0, 0), (0, 0), (1, 1), (1, 1)))
    xflat = jnp.transpose(xpad, (1, 0, 2, 3)).reshape(c, l_valid)     # (C, Lv)
    xflat = jnp.pad(xflat, ((0, cpad - c), (0, lp - l_valid)))        # (Cp, Lp)
    xext = jnp.pad(xflat, ((0, 0), (_MARGIN, _MARGIN)))               # (Cp, Lext)

    # Weights -> (Cp, 9*Cp), column index = (kh*3 + kw)*Cp + ci, zero-padded.
    wk = jnp.transpose(w_oihw.astype(jnp.float32), (2, 3, 1, 0))      # (3,3,Ci,Co)
    wk = jnp.pad(wk, ((0, 0), (0, 0), (0, cpad - c), (0, cpad - c)))
    w2d = wk.reshape(9 * cpad, cpad).T.astype(matmul_dtype)           # (Cp, 9*Cp)

    gamma_p = jnp.pad(gamma.astype(jnp.float32), (0, cpad - c), constant_values=1.0)
    beta_p = jnp.pad(beta.astype(jnp.float32), (0, cpad - c))
    gb = jnp.stack([gamma_p, beta_p], axis=1)                         # (Cp, 2)

    # Validity mask over padded-flat positions (same pattern for every image).
    rr = jnp.arange(hp)[:, None]
    cc = jnp.arange(wp)[None, :]
    m2 = ((rr >= 1) & (rr <= h) & (cc >= 1) & (cc <= w)).astype(jnp.float32)
    mask = jnp.broadcast_to(m2[None], (n, hp, wp)).reshape(1, l_valid)
    mask = jnp.pad(mask, ((0, 0), (0, lp - l_valid)))                 # (1, Lp)

    # ---- pallas_call ------------------------------------------------------
    kernel = functools.partial(
        _recurrent_kernel, wp=wp, lp=lp, inv_count=1.0 / float(n * h * w),
        t=t, matmul_dtype=matmul_dtype)

    scratch = [pltpu.VMEM((cpad, lext), jnp.float32)]
    if pack_im2col:
        scratch.append(pltpu.VMEM((9 * cpad, lp), matmul_dtype))

    # Size scoped VMEM from the actual buffers (x2 headroom for temporaries).
    itemsize = jnp.dtype(matmul_dtype).itemsize
    buf_bytes = 4 * (2 * cpad * lext + cpad * lp + cpad * 9 * cpad + 2 * cpad + lp)
    if pack_im2col:
        buf_bytes += itemsize * 9 * cpad * lp
    vmem_limit = min(max(2 * buf_bytes + (8 << 20), 32 << 20), 64 << 20)

    vmem = pl.BlockSpec(memory_space=pltpu.MemorySpace.VMEM)
    out_flat = pl.pallas_call(
        kernel,
        out_shape=jax.ShapeDtypeStruct((cpad, lp), x_nchw.dtype),
        in_specs=[vmem, vmem, vmem, vmem],
        out_specs=vmem,
        scratch_shapes=scratch,
        compiler_params=pltpu.CompilerParams(vmem_limit_bytes=vmem_limit),
    )(xext, w2d, gb, mask)

    # Undo the layout: drop channel/spatial padding, keep interior, back to NCHW.
    out = out_flat[:c, :l_valid].reshape(c, n, hp, wp)[:, :, 1:h + 1, 1:w + 1]
    return jnp.transpose(out, (1, 0, 2, 3))


def _ref_forward(x_nchw, w_oihw, bias, gamma, beta, t=2):
    """Pure-JAX reference mirroring the PyTorch module (train-mode BN, with bias)."""
    def conv(z):
        y = lax.conv_general_dilated(
            z, w_oihw, window_strides=(1, 1), padding=((1, 1), (1, 1)),
            dimension_numbers=("NCHW", "OIHW", "NCHW"))
        y = y + bias.reshape(1, -1, 1, 1)
        m = jnp.mean(y, axis=(0, 2, 3), keepdims=True)
        v = jnp.mean(jnp.square(y - m), axis=(0, 2, 3), keepdims=True)
        yn = (y - m) * lax.rsqrt(v + _BN_EPS)
        yn = yn * gamma.reshape(1, -1, 1, 1) + beta.reshape(1, -1, 1, 1)
        return jnp.maximum(yn, 0.0)

    x1 = None
    for i in range(t):
        if i == 0:
            x1 = conv(x_nchw)
        x1 = conv(x_nchw + x1)
    return x1


if __name__ == "__main__":
    N, C, H, W = 2, 4, 16, 16   # ch_out = 4, t = 2
    t = 2

    key = jax.random.PRNGKey(0)
    kx, kw, kb, kg, kbeta = jax.random.split(key, 5)

    x_nchw = jax.random.normal(kx, (N, C, H, W), dtype=jnp.float32)
    w_oihw = 0.2 * jax.random.normal(kw, (C, C, 3, 3), dtype=jnp.float32)
    bias = 0.1 * jax.random.normal(kb, (C,), dtype=jnp.float32)   # reference only
    gamma = 1.0 + 0.1 * jax.random.normal(kg, (C,), dtype=jnp.float32)
    beta = 0.1 * jax.random.normal(kbeta, (C,), dtype=jnp.float32)

    ref = _ref_forward(x_nchw, w_oihw, bias, gamma, beta, t=t)

    # Packed im2col path (default for small C).
    out_packed = recurrent_block(x_nchw, w_oihw, gamma, beta, t=t, pack_im2col=True)
    jax.block_until_ready(out_packed)
    err_packed = float(jnp.max(jnp.abs(out_packed - ref)))
    assert err_packed < 1e-2, f"packed path mismatch vs reference: {err_packed}"

    # Direct-accumulation path (production-C / v7x variant), validated too.
    out_direct = recurrent_block(x_nchw, w_oihw, gamma, beta, t=t, pack_im2col=False)
    jax.block_until_ready(out_direct)
    err_direct = float(jnp.max(jnp.abs(out_direct - ref)))
    assert err_direct < 1e-2, f"direct path mismatch vs reference: {err_direct}"

    print("KERNEL_OK")
</pallas_src>

<mosaic_0001>
module attributes {stable_mosaic.version = 11 : i64} {
  func.func @_recurrent_kernel(%arg0: memref<8x1024xf32, #tpu.memory_space<vmem>>, %arg1: memref<8x72xf32, #tpu.memory_space<vmem>>, %arg2: memref<8x2xf32, #tpu.memory_space<vmem>>, %arg3: memref<1x768xf32, #tpu.memory_space<vmem>>, %arg4: memref<8x768xf32, #tpu.memory_space<vmem>>, %arg5: memref<8x1024xf32, #tpu.memory_space<vmem>>, %arg6: memref<72x768xf32, #tpu.memory_space<vmem>>) attributes {dimension_semantics = [], scalar_prefetch = 0 : i64, scratch_operands = 2 : i64, tpu.core_type = #tpu.core_type<tc>} {
    %c0 = arith.constant 0 : index
    %c0_0 = arith.constant 0 : index
    %0 = vector.load %arg3[%c0, %c0_0] : memref<1x768xf32, #tpu.memory_space<vmem>>, vector<1x768xf32>
    %c0_1 = arith.constant 0 : index
    %c0_2 = arith.constant 0 : index
    %1 = vector.load %arg2[%c0_1, %c0_2] : memref<8x2xf32, #tpu.memory_space<vmem>>, vector<8x1xf32>
    %c0_3 = arith.constant 0 : index
    %c1 = arith.constant 1 : index
    %2 = vector.load %arg2[%c0_3, %c1] : memref<8x2xf32, #tpu.memory_space<vmem>>, vector<8x1xf32>
    %cst = arith.constant 0.000000e+00 : f32
    %3 = vector.broadcast %cst : f32 to vector<8x128xf32>
    %c0_4 = arith.constant 0 : index
    %c0_5 = arith.constant 0 : index
    %4 = vector.load %arg5[%c0_4, %c0_5] : memref<8x1024xf32, #tpu.memory_space<vmem>>, vector<8x128xf32>
    tpu.vector_store %arg5[%c0_4, %c0_5], %3 {strides = array<i32>} : memref<8x1024xf32, #tpu.memory_space<vmem>>, vector<8x128xf32>,
    %c0_6 = arith.constant 0 : index
    %c896 = arith.constant 896 : index
    %5 = vector.load %arg5[%c0_6, %c896] : memref<8x1024xf32, #tpu.memory_space<vmem>>, vector<8x128xf32>
    tpu.vector_store %arg5[%c0_6, %c896], %3 {strides = array<i32>} : memref<8x1024xf32, #tpu.memory_space<vmem>>, vector<8x128xf32>,
    %c0_7 = arith.constant 0 : index
    %c109 = arith.constant 109 : index
    %6 = vector.load %arg0[%c0_7, %c109] : memref<8x1024xf32, #tpu.memory_space<vmem>>, vector<8x768xf32>
    %c0_8 = arith.constant 0 : index
    %c0_9 = arith.constant 0 : index
    %7 = vector.load %arg6[%c0_8, %c0_9] : memref<72x768xf32, #tpu.memory_space<vmem>>, vector<8x768xf32>
    tpu.vector_store %arg6[%c0_8, %c0_9], %6 {strides = array<i32>} : memref<72x768xf32, #tpu.memory_space<vmem>>, vector<8x768xf32>,
    %c0_10 = arith.constant 0 : index
    %c110 = arith.constant 110 : index
    %8 = vector.load %arg0[%c0_10, %c110] : memref<8x1024xf32, #tpu.memory_space<vmem>>, vector<8x768xf32>
    %c8 = arith.constant 8 : index
    %c0_11 = arith.constant 0 : index
    %9 = vector.load %arg6[%c8, %c0_11] : memref<72x768xf32, #tpu.memory_space<vmem>>, vector<8x768xf32>
    tpu.vector_store %arg6[%c8, %c0_11], %8 {strides = array<i32>} : memref<72x768xf32, #tpu.memory_space<vmem>>, vector<8x768xf32>,
    %c0_12 = arith.constant 0 : index
    %c111 = arith.constant 111 : index
    %10 = vector.load %arg0[%c0_12, %c111] : memref<8x1024xf32, #tpu.memory_space<vmem>>, vector<8x768xf32>
    %c16 = arith.constant 16 : index
    %c0_13 = arith.constant 0 : index
    %11 = vector.load %arg6[%c16, %c0_13] : memref<72x768xf32, #tpu.memory_space<vmem>>, vector<8x768xf32>
    tpu.vector_store %arg6[%c16, %c0_13], %10 {strides = array<i32>} : memref<72x768xf32, #tpu.memory_space<vmem>>, vector<8x768xf32>,
    %c0_14 = arith.constant 0 : index
    %c127 = arith.constant 127 : index
    %12 = vector.load %arg0[%c0_14, %c127] : memref<8x1024xf32, #tpu.memory_space<vmem>>, vector<8x768xf32>
    %c24 = arith.constant 24 : index
    %c0_15 = arith.constant 0 : index
    %13 = vector.load %arg6[%c24, %c0_15] : memref<72x768xf32, #tpu.memory_space<vmem>>, vector<8x768xf32>
    tpu.vector_store %arg6[%c24, %c0_15], %12 {strides = array<i32>} : memref<72x768xf32, #tpu.memory_space<vmem>>, vector<8x768xf32>,
    %c0_16 = arith.constant 0 : index
    %c128 = arith.constant 128 : index
    %14 = vector.load %arg0[%c0_16, %c128] : memref<8x1024xf32, #tpu.memory_space<vmem>>, vector<8x768xf32>
    %c32 = arith.constant 32 : index
    %c0_17 = arith.constant 0 : index
    %15 = vector.load %arg6[%c32, %c0_17] : memref<72x768xf32, #tpu.memory_space<vmem>>, vector<8x768xf32>
    tpu.vector_store %arg6[%c32, %c0_17], %14 {strides = array<i32>} : memref<72x768xf32, #tpu.memory_space<vmem>>, vector<8x768xf32>,
    %c0_18 = arith.constant 0 : index
    %c129 = arith.constant 129 : index
    %16 = vector.load %arg0[%c0_18, %c129] : memref<8x1024xf32, #tpu.memory_space<vmem>>, vector<8x768xf32>
    %c40 = arith.constant 40 : index
    %c0_19 = arith.constant 0 : index
    %17 = vector.load %arg6[%c40, %c0_19] : memref<72x768xf32, #tpu.memory_space<vmem>>, vector<8x768xf32>
    tpu.vector_store %arg6[%c40, %c0_19], %16 {strides = array<i32>} : memref<72x768xf32, #tpu.memory_space<vmem>>, vector<8x768xf32>,
    %c0_20 = arith.constant 0 : index
    %c145 = arith.constant 145 : index
    %18 = vector.load %arg0[%c0_20, %c145] : memref<8x1024xf32, #tpu.memory_space<vmem>>, vector<8x768xf32>
    %c48 = arith.constant 48 : index
    %c0_21 = arith.constant 0 : index
    %19 = vector.load %arg6[%c48, %c0_21] : memref<72x768xf32, #tpu.memory_space<vmem>>, vector<8x768xf32>
    tpu.vector_store %arg6[%c48, %c0_21], %18 {strides = array<i32>} : memref<72x768xf32, #tpu.memory_space<vmem>>, vector<8x768xf32>,
    %c0_22 = arith.constant 0 : index
    %c146 = arith.constant 146 : index
    %20 = vector.load %arg0[%c0_22, %c146] : memref<8x1024xf32, #tpu.memory_space<vmem>>, vector<8x768xf32>
    %c56 = arith.constant 56 : index
    %c0_23 = arith.constant 0 : index
    %21 = vector.load %arg6[%c56, %c0_23] : memref<72x768xf32, #tpu.memory_space<vmem>>, vector<8x768xf32>
    tpu.vector_store %arg6[%c56, %c0_23], %20 {strides = array<i32>} : memref<72x768xf32, #tpu.memory_space<vmem>>, vector<8x768xf32>,
    %c0_24 = arith.constant 0 : index
    %c147 = arith.constant 147 : index
    %22 = vector.load %arg0[%c0_24, %c147] : memref<8x1024xf32, #tpu.memory_space<vmem>>, vector<8x768xf32>
    %c64 = arith.constant 64 : index
    %c0_25 = arith.constant 0 : index
    %23 = vector.load %arg6[%c64, %c0_25] : memref<72x768xf32, #tpu.memory_space<vmem>>, vector<8x768xf32>
    tpu.vector_store %arg6[%c64, %c0_25], %22 {strides = array<i32>} : memref<72x768xf32, #tpu.memory_space<vmem>>, vector<8x768xf32>,
    %c0_26 = arith.constant 0 : index
    %c0_27 = arith.constant 0 : index
    %24 = vector.load %arg1[%c0_26, %c0_27] : memref<8x72xf32, #tpu.memory_space<vmem>>, vector<8x72xf32>
    %c0_28 = arith.constant 0 : index
    %c0_29 = arith.constant 0 : index
    %25 = vector.load %arg6[%c0_28, %c0_29] : memref<72x768xf32, #tpu.memory_space<vmem>>, vector<72x768xf32>
    %cst_30 = arith.constant dense<0.000000e+00> : vector<8x768xf32>
    %26 = tpu.matmul %24, %25, %cst_30 {dimension_numbers = #tpu.dot_dimension_numbers<[1], [0], [0], [1], [0, 0, 1, 1], [], []>} : vector<8x72xf32>, vector<72x768xf32>, vector<8x768xf32> -> vector<8x768xf32>
    %27 = vector.broadcast %0 : vector<1x768xf32> to vector<8x768xf32>
    %28 = arith.mulf %26, %27 : vector<8x768xf32>
    %cst_31 = arith.constant dense<0.000000e+00> : vector<8xf32>
    %29 = vector.multi_reduction <add>, %28, %cst_31 [1] : vector<8x768xf32> to vector<8xf32>
    %30 = vector.shape_cast %29 : vector<8xf32> to vector<8x1xf32>
    %31 = arith.mulf %28, %28 : vector<8x768xf32>
    %cst_32 = arith.constant dense<0.000000e+00> : vector<8xf32>
    %32 = vector.multi_reduction <add>, %31, %cst_32 [1] : vector<8x768xf32> to vector<8xf32>
    %33 = vector.shape_cast %32 : vector<8xf32> to vector<8x1xf32>
    %cst_33 = arith.constant 0.001953125 : f32
    %34 = vector.broadcast %cst_33 : f32 to vector<8x1xf32>
    %35 = arith.mulf %30, %34 : vector<8x1xf32>
    %cst_34 = arith.constant 0.001953125 : f32
    %36 = vector.broadcast %cst_34 : f32 to vector<8x1xf32>
    %37 = arith.mulf %33, %36 : vector<8x1xf32>
    %38 = arith.mulf %35, %35 : vector<8x1xf32>
    %39 = arith.subf %37, %38 : vector<8x1xf32>
    %cst_35 = arith.constant 0.000000e+00 : f32
    %40 = vector.broadcast %cst_35 : f32 to vector<8x1xf32>
    %41 = arith.maximumf %39, %40 : vector<8x1xf32>
    %cst_36 = arith.constant 9.99999974E-6 : f32
    %42 = vector.broadcast %cst_36 : f32 to vector<8x1xf32>
    %43 = arith.addf %41, %42 : vector<8x1xf32>
    %44 = math.rsqrt %43 : vector<8x1xf32>
    %45 = arith.mulf %1, %44 : vector<8x1xf32>
    %46 = arith.mulf %35, %45 : vector<8x1xf32>
    %47 = arith.subf %2, %46 : vector<8x1xf32>
    %48 = vector.broadcast %45 : vector<8x1xf32> to vector<8x768xf32>
    %49 = arith.mulf %26, %48 : vector<8x768xf32>
    %50 = vector.broadcast %47 : vector<8x1xf32> to vector<8x768xf32>
    %51 = arith.addf %49, %50 : vector<8x768xf32>
    %cst_37 = arith.constant 0.000000e+00 : f32
    %52 = vector.broadcast %cst_37 : f32 to vector<8x768xf32>
    %53 = arith.maximumf %51, %52 : vector<8x768xf32>
    %54 = vector.broadcast %0 : vector<1x768xf32> to vector<8x768xf32>
    %55 = arith.mulf %53, %54 : vector<8x768xf32>
    %c0_38 = arith.constant 0 : index
    %c128_39 = arith.constant 128 : index
    %56 = vector.load %arg0[%c0_38, %c128_39] : memref<8x1024xf32, #tpu.memory_space<vmem>>, vector<8x768xf32>
    %57 = arith.addf %56, %55 : vector<8x768xf32>
    %c0_40 = arith.constant 0 : index
    %c128_41 = arith.constant 128 : index
    %58 = vector.load %arg5[%c0_40, %c128_41] : memref<8x1024xf32, #tpu.memory_space<vmem>>, vector<8x768xf32>
    tpu.vector_store %arg5[%c0_40, %c128_41], %57 {strides = array<i32>} : memref<8x1024xf32, #tpu.memory_space<vmem>>, vector<8x768xf32>,
    %c0_42 = arith.constant 0 : index
    %c109_43 = arith.constant 109 : index
    %59 = vector.load %arg5[%c0_42, %c109_43] : memref<8x1024xf32, #tpu.memory_space<vmem>>, vector<8x768xf32>
    %c0_44 = arith.constant 0 : index
    %c0_45 = arith.constant 0 : index
    %60 = vector.load %arg6[%c0_44, %c0_45] : memref<72x768xf32, #tpu.memory_space<vmem>>, vector<8x768xf32>
    tpu.vector_store %arg6[%c0_44, %c0_45], %59 {strides = array<i32>} : memref<72x768xf32, #tpu.memory_space<vmem>>, vector<8x768xf32>,
    %c0_46 = arith.constant 0 : index
    %c110_47 = arith.constant 110 : index
    %61 = vector.load %arg5[%c0_46, %c110_47] : memref<8x1024xf32, #tpu.memory_space<vmem>>, vector<8x768xf32>
    %c8_48 = arith.constant 8 : index
    %c0_49 = arith.constant 0 : index
    %62 = vector.load %arg6[%c8_48, %c0_49] : memref<72x768xf32, #tpu.memory_space<vmem>>, vector<8x768xf32>
    tpu.vector_store %arg6[%c8_48, %c0_49], %61 {strides = array<i32>} : memref<72x768xf32, #tpu.memory_space<vmem>>, vector<8x768xf32>,
    %c0_50 = arith.constant 0 : index
    %c111_51 = arith.constant 111 : index
    %63 = vector.load %arg5[%c0_50, %c111_51] : memref<8x1024xf32, #tpu.memory_space<vmem>>, vector<8x768xf32>
    %c16_52 = arith.constant 16 : index
    %c0_53 = arith.constant 0 : index
    %64 = vector.load %arg6[%c16_52, %c0_53] : memref<72x768xf32, #tpu.memory_space<vmem>>, vector<8x768xf32>
    tpu.vector_store %arg6[%c16_52, %c0_53], %63 {strides = array<i32>} : memref<72x768xf32, #tpu.memory_space<vmem>>, vector<8x768xf32>,
    %c0_54 = arith.constant 0 : index
    %c127_55 = arith.constant 127 : index
    %65 = vector.load %arg5[%c0_54, %c127_55] : memref<8x1024xf32, #tpu.memory_space<vmem>>, vector<8x768xf32>
    %c24_56 = arith.constant 24 : index
    %c0_57 = arith.constant 0 : index
    %66 = vector.load %arg6[%c24_56, %c0_57] : memref<72x768xf32, #tpu.memory_space<vmem>>, vector<8x768xf32>
    tpu.vector_store %arg6[%c24_56, %c0_57], %65 {strides = array<i32>} : memref<72x768xf32, #tpu.memory_space<vmem>>, vector<8x768xf32>,
    %c0_58 = arith.constant 0 : index
    %c128_59 = arith.constant 128 : index
    %67 = vector.load %arg5[%c0_58, %c128_59] : memref<8x1024xf32, #tpu.memory_space<vmem>>, vector<8x768xf32>
    %c32_60 = arith.constant 32 : index
    %c0_61 = arith.constant 0 : index
    %68 = vector.load %arg6[%c32_60, %c0_61] : memref<72x768xf32, #tpu.memory_space<vmem>>, vector<8x768xf32>
    tpu.vector_store %arg6[%c32_60, %c0_61], %67 {strides = array<i32>} : memref<72x768xf32, #tpu.memory_space<vmem>>, vector<8x768xf32>,
    %c0_62 = arith.constant 0 : index
    %c129_63 = arith.constant 129 : index
    %69 = vector.load %arg5[%c0_62, %c129_63] : memref<8x1024xf32, #tpu.memory_space<vmem>>, vector<8x768xf32>
    %c40_64 = arith.constant 40 : index
    %c0_65 = arith.constant 0 : index
    %70 = vector.load %arg6[%c40_64, %c0_65] : memref<72x768xf32, #tpu.memory_space<vmem>>, vector<8x768xf32>
    tpu.vector_store %arg6[%c40_64, %c0_65], %69 {strides = array<i32>} : memref<72x768xf32, #tpu.memory_space<vmem>>, vector<8x768xf32>,
    %c0_66 = arith.constant 0 : index
    %c145_67 = arith.constant 145 : index
    %71 = vector.load %arg5[%c0_66, %c145_67] : memref<8x1024xf32, #tpu.memory_space<vmem>>, vector<8x768xf32>
    %c48_68 = arith.constant 48 : index
    %c0_69 = arith.constant 0 : index
    %72 = vector.load %arg6[%c48_68, %c0_69] : memref<72x768xf32, #tpu.memory_space<vmem>>, vector<8x768xf32>
    tpu.vector_store %arg6[%c48_68, %c0_69], %71 {strides = array<i32>} : memref<72x768xf32, #tpu.memory_space<vmem>>, vector<8x768xf32>,
    %c0_70 = arith.constant 0 : index
    %c146_71 = arith.constant 146 : index
    %73 = vector.load %arg5[%c0_70, %c146_71] : memref<8x1024xf32, #tpu.memory_space<vmem>>, vector<8x768xf32>
    %c56_72 = arith.constant 56 : index
    %c0_73 = arith.constant 0 : index
    %74 = vector.load %arg6[%c56_72, %c0_73] : memref<72x768xf32, #tpu.memory_space<vmem>>, vector<8x768xf32>
    tpu.vector_store %arg6[%c56_72, %c0_73], %73 {strides = array<i32>} : memref<72x768xf32, #tpu.memory_space<vmem>>, vector<8x768xf32>,
    %c0_74 = arith.constant 0 : index
    %c147_75 = arith.constant 147 : index
    %75 = vector.load %arg5[%c0_74, %c147_75] : memref<8x1024xf32, #tpu.memory_space<vmem>>, vector<8x768xf32>
    %c64_76 = arith.constant 64 : index
    %c0_77 = arith.constant 0 : index
    %76 = vector.load %arg6[%c64_76, %c0_77] : memref<72x768xf32, #tpu.memory_space<vmem>>, vector<8x768xf32>
    tpu.vector_store %arg6[%c64_76, %c0_77], %75 {strides = array<i32>} : memref<72x768xf32, #tpu.memory_space<vmem>>, vector<8x768xf32>,
    %c0_78 = arith.constant 0 : index
    %c0_79 = arith.constant 0 : index
    %77 = vector.load %arg1[%c0_78, %c0_79] : memref<8x72xf32, #tpu.memory_space<vmem>>, vector<8x72xf32>
    %c0_80 = arith.constant 0 : index
    %c0_81 = arith.constant 0 : index
    %78 = vector.load %arg6[%c0_80, %c0_81] : memref<72x768xf32, #tpu.memory_space<vmem>>, vector<72x768xf32>
    %cst_82 = arith.constant dense<0.000000e+00> : vector<8x768xf32>
    %79 = tpu.matmul %77, %78, %cst_82 {dimension_numbers = #tpu.dot_dimension_numbers<[1], [0], [0], [1], [0, 0, 1, 1], [], []>} : vector<8x72xf32>, vector<72x768xf32>, vector<8x768xf32> -> vector<8x768xf32>
    %80 = vector.broadcast %0 : vector<1x768xf32> to vector<8x768xf32>
    %81 = arith.mulf %79, %80 : vector<8x768xf32>
    %cst_83 = arith.constant dense<0.000000e+00> : vector<8xf32>
    %82 = vector.multi_reduction <add>, %81, %cst_83 [1] : vector<8x768xf32> to vector<8xf32>
    %83 = vector.shape_cast %82 : vector<8xf32> to vector<8x1xf32>
    %84 = arith.mulf %81, %81 : vector<8x768xf32>
    %cst_84 = arith.constant dense<0.000000e+00> : vector<8xf32>
    %85 = vector.multi_reduction <add>, %84, %cst_84 [1] : vector<8x768xf32> to vector<8xf32>
    %86 = vector.shape_cast %85 : vector<8xf32> to vector<8x1xf32>
    %cst_85 = arith.constant 0.001953125 : f32
    %87 = vector.broadcast %cst_85 : f32 to vector<8x1xf32>
    %88 = arith.mulf %83, %87 : vector<8x1xf32>
    %cst_86 = arith.constant 0.001953125 : f32
    %89 = vector.broadcast %cst_86 : f32 to vector<8x1xf32>
    %90 = arith.mulf %86, %89 : vector<8x1xf32>
    %91 = arith.mulf %88, %88 : vector<8x1xf32>
    %92 = arith.subf %90, %91 : vector<8x1xf32>
    %cst_87 = arith.constant 0.000000e+00 : f32
    %93 = vector.broadcast %cst_87 : f32 to vector<8x1xf32>
    %94 = arith.maximumf %92, %93 : vector<8x1xf32>
    %cst_88 = arith.constant 9.99999974E-6 : f32
    %95 = vector.broadcast %cst_88 : f32 to vector<8x1xf32>
    %96 = arith.addf %94, %95 : vector<8x1xf32>
    %97 = math.rsqrt %96 : vector<8x1xf32>
    %98 = arith.mulf %1, %97 : vector<8x1xf32>
    %99 = arith.mulf %88, %98 : vector<8x1xf32>
    %100 = arith.subf %2, %99 : vector<8x1xf32>
    %101 = vector.broadcast %98 : vector<8x1xf32> to vector<8x768xf32>
    %102 = arith.mulf %79, %101 : vector<8x768xf32>
    %103 = vector.broadcast %100 : vector<8x1xf32> to vector<8x768xf32>
    %104 = arith.addf %102, %103 : vector<8x768xf32>
    %cst_89 = arith.constant 0.000000e+00 : f32
    %105 = vector.broadcast %cst_89 : f32 to vector<8x768xf32>
    %106 = arith.maximumf %104, %105 : vector<8x768xf32>
    %107 = vector.broadcast %0 : vector<1x768xf32> to vector<8x768xf32>
    %108 = arith.mulf %106, %107 : vector<8x768xf32>
    %c0_90 = arith.constant 0 : index
    %c128_91 = arith.constant 128 : index
    %109 = vector.load %arg0[%c0_90, %c128_91] : memref<8x1024xf32, #tpu.memory_space<vmem>>, vector<8x768xf32>
    %110 = arith.addf %109, %108 : vector<8x768xf32>
    %c0_92 = arith.constant 0 : index
    %c128_93 = arith.constant 128 : index
    %111 = vector.load %arg5[%c0_92, %c128_93] : memref<8x1024xf32, #tpu.memory_space<vmem>>, vector<8x768xf32>
    tpu.vector_store %arg5[%c0_92, %c128_93], %110 {strides = array<i32>} : memref<8x1024xf32, #tpu.memory_space<vmem>>, vector<8x768xf32>,
    %c0_94 = arith.constant 0 : index
    %c109_95 = arith.constant 109 : index
    %112 = vector.load %arg5[%c0_94, %c109_95] : memref<8x1024xf32, #tpu.memory_space<vmem>>, vector<8x768xf32>
    %c0_96 = arith.constant 0 : index
    %c0_97 = arith.constant 0 : index
    %113 = vector.load %arg6[%c0_96, %c0_97] : memref<72x768xf32, #tpu.memory_space<vmem>>, vector<8x768xf32>
    tpu.vector_store %arg6[%c0_96, %c0_97], %112 {strides = array<i32>} : memref<72x768xf32, #tpu.memory_space<vmem>>, vector<8x768xf32>,
    %c0_98 = arith.constant 0 : index
    %c110_99 = arith.constant 110 : index
    %114 = vector.load %arg5[%c0_98, %c110_99] : memref<8x1024xf32, #tpu.memory_space<vmem>>, vector<8x768xf32>
    %c8_100 = arith.constant 8 : index
    %c0_101 = arith.constant 0 : index
    %115 = vector.load %arg6[%c8_100, %c0_101] : memref<72x768xf32, #tpu.memory_space<vmem>>, vector<8x768xf32>
    tpu.vector_store %arg6[%c8_100, %c0_101], %114 {strides = array<i32>} : memref<72x768xf32, #tpu.memory_space<vmem>>, vector<8x768xf32>,
    %c0_102 = arith.constant 0 : index
    %c111_103 = arith.constant 111 : index
    %116 = vector.load %arg5[%c0_102, %c111_103] : memref<8x1024xf32, #tpu.memory_space<vmem>>, vector<8x768xf32>
    %c16_104 = arith.constant 16 : index
    %c0_105 = arith.constant 0 : index
    %117 = vector.load %arg6[%c16_104, %c0_105] : memref<72x768xf32, #tpu.memory_space<vmem>>, vector<8x768xf32>
    tpu.vector_store %arg6[%c16_104, %c0_105], %116 {strides = array<i32>} : memref<72x768xf32, #tpu.memory_space<vmem>>, vector<8x768xf32>,
    %c0_106 = arith.constant 0 : index
    %c127_107 = arith.constant 127 : index
    %118 = vector.load %arg5[%c0_106, %c127_107] : memref<8x1024xf32, #tpu.memory_space<vmem>>, vector<8x768xf32>
    %c24_108 = arith.constant 24 : index
    %c0_109 = arith.constant 0 : index
    %119 = vector.load %arg6[%c24_108, %c0_109] : memref<72x768xf32, #tpu.memory_space<vmem>>, vector<8x768xf32>
    tpu.vector_store %arg6[%c24_108, %c0_109], %118 {strides = array<i32>} : memref<72x768xf32, #tpu.memory_space<vmem>>, vector<8x768xf32>,
    %c0_110 = arith.constant 0 : index
    %c128_111 = arith.constant 128 : index
    %120 = vector.load %arg5[%c0_110, %c128_111] : memref<8x1024xf32, #tpu.memory_space<vmem>>, vector<8x768xf32>
    %c32_112 = arith.constant 32 : index
    %c0_113 = arith.constant 0 : index
    %121 = vector.load %arg6[%c32_112, %c0_113] : memref<72x768xf32, #tpu.memory_space<vmem>>, vector<8x768xf32>
    tpu.vector_store %arg6[%c32_112, %c0_113], %120 {strides = array<i32>} : memref<72x768xf32, #tpu.memory_space<vmem>>, vector<8x768xf32>,
    %c0_114 = arith.constant 0 : index
    %c129_115 = arith.constant 129 : index
    %122 = vector.load %arg5[%c0_114, %c129_115] : memref<8x1024xf32, #tpu.memory_space<vmem>>, vector<8x768xf32>
    %c40_116 = arith.constant 40 : index
    %c0_117 = arith.constant 0 : index
    %123 = vector.load %arg6[%c40_116, %c0_117] : memref<72x768xf32, #tpu.memory_space<vmem>>, vector<8x768xf32>
    tpu.vector_store %arg6[%c40_116, %c0_117], %122 {strides = array<i32>} : memref<72x768xf32, #tpu.memory_space<vmem>>, vector<8x768xf32>,
    %c0_118 = arith.constant 0 : index
    %c145_119 = arith.constant 145 : index
    %124 = vector.load %arg5[%c0_118, %c145_119] : memref<8x1024xf32, #tpu.memory_space<vmem>>, vector<8x768xf32>
    %c48_120 = arith.constant 48 : index
    %c0_121 = arith.constant 0 : index
    %125 = vector.load %arg6[%c48_120, %c0_121] : memref<72x768xf32, #tpu.memory_space<vmem>>, vector<8x768xf32>
    tpu.vector_store %arg6[%c48_120, %c0_121], %124 {strides = array<i32>} : memref<72x768xf32, #tpu.memory_space<vmem>>, vector<8x768xf32>,
    %c0_122 = arith.constant 0 : index
    %c146_123 = arith.constant 146 : index
    %126 = vector.load %arg5[%c0_122, %c146_123] : memref<8x1024xf32, #tpu.memory_space<vmem>>, vector<8x768xf32>
    %c56_124 = arith.constant 56 : index
    %c0_125 = arith.constant 0 : index
    %127 = vector.load %arg6[%c56_124, %c0_125] : memref<72x768xf32, #tpu.memory_space<vmem>>, vector<8x768xf32>
    tpu.vector_store %arg6[%c56_124, %c0_125], %126 {strides = array<i32>} : memref<72x768xf32, #tpu.memory_space<vmem>>, vector<8x768xf32>,
    %c0_126 = arith.constant 0 : index
    %c147_127 = arith.constant 147 : index
    %128 = vector.load %arg5[%c0_126, %c147_127] : memref<8x1024xf32, #tpu.memory_space<vmem>>, vector<8x768xf32>
    %c64_128 = arith.constant 64 : index
    %c0_129 = arith.constant 0 : index
    %129 = vector.load %arg6[%c64_128, %c0_129] : memref<72x768xf32, #tpu.memory_space<vmem>>, vector<8x768xf32>
    tpu.vector_store %arg6[%c64_128, %c0_129], %128 {strides = array<i32>} : memref<72x768xf32, #tpu.memory_space<vmem>>, vector<8x768xf32>,
    %c0_130 = arith.constant 0 : index
    %c0_131 = arith.constant 0 : index
    %130 = vector.load %arg1[%c0_130, %c0_131] : memref<8x72xf32, #tpu.memory_space<vmem>>, vector<8x72xf32>
    %c0_132 = arith.constant 0 : index
    %c0_133 = arith.constant 0 : index
    %131 = vector.load %arg6[%c0_132, %c0_133] : memref<72x768xf32, #tpu.memory_space<vmem>>, vector<72x768xf32>
    %cst_134 = arith.constant dense<0.000000e+00> : vector<8x768xf32>
    %132 = tpu.matmul %130, %131, %cst_134 {dimension_numbers = #tpu.dot_dimension_numbers<[1], [0], [0], [1], [0, 0, 1, 1], [], []>} : vector<8x72xf32>, vector<72x768xf32>, vector<8x768xf32> -> vector<8x768xf32>
    %133 = vector.broadcast %0 : vector<1x768xf32> to vector<8x768xf32>
    %134 = arith.mulf %132, %133 : vector<8x768xf32>
    %cst_135 = arith.constant dense<0.000000e+00> : vector<8xf32>
    %135 = vector.multi_reduction <add>, %134, %cst_135 [1] : vector<8x768xf32> to vector<8xf32>
    %136 = vector.shape_cast %135 : vector<8xf32> to vector<8x1xf32>
    %137 = arith.mulf %134, %134 : vector<8x768xf32>
    %cst_136 = arith.constant dense<0.000000e+00> : vector<8xf32>
    %138 = vector.multi_reduction <add>, %137, %cst_136 [1] : vector<8x768xf32> to vector<8xf32>
    %139 = vector.shape_cast %138 : vector<8xf32> to vector<8x1xf32>
    %cst_137 = arith.constant 0.001953125 : f32
    %140 = vector.broadcast %cst_137 : f32 to vector<8x1xf32>
    %141 = arith.mulf %136, %140 : vector<8x1xf32>
    %cst_138 = arith.constant 0.001953125 : f32
    %142 = vector.broadcast %cst_138 : f32 to vector<8x1xf32>
    %143 = arith.mulf %139, %142 : vector<8x1xf32>
    %144 = arith.mulf %141, %141 : vector<8x1xf32>
    %145 = arith.subf %143, %144 : vector<8x1xf32>
    %cst_139 = arith.constant 0.000000e+00 : f32
    %146 = vector.broadcast %cst_139 : f32 to vector<8x1xf32>
    %147 = arith.maximumf %145, %146 : vector<8x1xf32>
    %cst_140 = arith.constant 9.99999974E-6 : f32
    %148 = vector.broadcast %cst_140 : f32 to vector<8x1xf32>
    %149 = arith.addf %147, %148 : vector<8x1xf32>
    %150 = math.rsqrt %149 : vector<8x1xf32>
    %151 = arith.mulf %1, %150 : vector<8x1xf32>
    %152 = arith.mulf %141, %151 : vector<8x1xf32>
    %153 = arith.subf %2, %152 : vector<8x1xf32>
    %154 = vector.broadcast %151 : vector<8x1xf32> to vector<8x768xf32>
    %155 = arith.mulf %132, %154 : vector<8x768xf32>
    %156 = vector.broadcast %153 : vector<8x1xf32> to vector<8x768xf32>
    %157 = arith.addf %155, %156 : vector<8x768xf32>
    %cst_141 = arith.constant 0.000000e+00 : f32
    %158 = vector.broadcast %cst_141 : f32 to vector<8x768xf32>
    %159 = arith.maximumf %157, %158 : vector<8x768xf32>
    %c0_142 = arith.constant 0 : index
    %c0_143 = arith.constant 0 : index
    %160 = vector.load %arg4[%c0_142, %c0_143] : memref<8x768xf32, #tpu.memory_space<vmem>>, vector<8x768xf32>
    tpu.vector_store %arg4[%c0_142, %c0_143], %159 {strides = array<i32>} : memref<8x768xf32, #tpu.memory_space<vmem>>, vector<8x768xf32>,
    return
  }
}

</mosaic_0001>

<bundles_post_ra>
// kernel: tpu_custom_call.1
= control target key start
LH: loop header
LB: loop body
LE: loop exit
PB: predicated region body
PF: predicated region fallthrough
CT: control target
= control target key end

     0   :  { %9 = vsyncpa [#allocation5], 0  ;;  %s3188_s0 = inlined_call_operand.hbm [shape: f32[8,1024], index: 0, kind: input, shape index: {}]   ;;  %s3189_s1 = inlined_call_operand.vmem [shape: f32[8,72], index: 1, kind: input, shape index: {}]   ;;  %s3190_s2 = inlined_call_operand.vmem [shape: f32[8,2], index: 2, kind: input, shape index: {}]   ;;  %s3191_s3 = inlined_call_operand.vmem [shape: f32[1,768], index: 3, kind: input, shape index: {}]   ;;  %s3192_s4 = inlined_call_operand.hbm [shape: f32[8,768], index: 4, kind: output, shape index: {}]  }
   0x1   :  { %10 = vsyncpa [#allocation6], 0  ;;  %s2376_s15 = smov [#allocation4]  }
   0x2   :  { %s17_s16 = sshll.u32 %s2376_s15, 4  ;;  %s18_s16 = int_to_ptr.vmem [resolvable:$true] %s17_s16 }
   0x3   :  { %s2340_s17 = scalar_lea.vmem %s18_s16, 1024  ;;  %p2345_p1 = scmp.lt.s32.totalorder %s18_s16, %s18_s16 }
   0x4   :  { %p2341_p0 = scmp.ne.s32.totalorder %s18_s16, %s2340_s17  ;;  %p2346_p2 = scmp.lt.s32.totalorder %s2340_s17, %s2340_s17 }
   0x6   :  { %p2347_p3 = por %p2346_p2, %p2345_p1 }
   0x8   :  { %p2348_p4 = pnand %p2347_p3, %p2341_p0 }
   0xa   :  { %2351 = shalt.err (!%p2348_p4)
}
   0xb   :  { %20 = dma.hbm_to_vmem [thread:$0]  %s3188_s0, 1024, %s18_s16, [#allocation5]  }
   0xc   :  { %2372 = dma.done.wait [#allocation5], 1024  }
   0xd   :  { %2373 = vsyncadd [#allocation5], 4294966272  ;;  %v2417_v0 = vld [vmem:[#allocation4 + $0x10] sm:$0xff]  ;;  %v2419_v1 = vld [vmem:[#allocation4 + $0x8] sm:$0xff]  ;;  %s2377_s20 = smov 109   ;;  %s2378_s21 = smov 110  }
   0xe   :  { %391 = vrot.lane.b32.xlu0 %v2417_v0, %s2377_s20  ;;  %389 = vrot.lane.b32.xlu1 %v2419_v1, %s2377_s20  ;;  %v2425_v2 = vld [vmem:[#allocation4 + $0x18] sm:$0xff]  ;;  %s2379_s0 = smov 111   ;;  %s2380_s22 = smov 127   ;;  %v175_v3 = vld [vmem:[#allocation4] sm:$0xff]  ;;  %v2461_v4 = vld [vmem:[#allocation4 + $0x28] sm:$0xff]  ;;  %v2385_v6 = vmov 0.0  }
   0xf   :  { %s2381_s23 = smov 1   ;;  %s2382_s24 = smov 17   ;;  %v2463_v5 = vld [vmem:[#allocation4 + $0x20] sm:$0xff]  ;;  %545 = vmatprep.mubr.f32.mxu0 %v2385_v6  ;;  %616 = vmatprep.mubr.f32.mxu1 %v2385_v6  ;;  %v2485_v7 = vld [vmem:[#allocation4 + $0x30] sm:$0xff]  ;;  %v381_v8 = vld [vmem:[#allocation4 + $0x38] sm:$0xff]  ;;  %vm403_vm0 = vcmask 891904  }
  0x10   :  { %s2383_s25 = smov 18   ;;  %s2384_s26 = smov 19   ;;  %vm356_vm1 = vcmask 900096   ;;  %vm309_vm2 = vcmask 908288   ;;  %vm262_vm3 = vcmask 1039360   ;;  %vm203_vm4 = vcmask 7168  }
  0x11   :  { %vm156_vm5 = vcmask 138240   ;;  %vm109_vm6 = vcmask 146432   ;;  %vm62_vm7 = vcmask 154624   ;;  %v2578_v54 = vld [vmem:[%s3189_s1] sm:$0xff]  ;;  %vm477_vm8 = vcmask 588800  }
  0x12   :  { %393 = vrot.lane.b32.xlu0 %v2425_v2, %s2377_s20  ;;  %344 = vrot.lane.b32.xlu1 %v2417_v0, %s2378_s21 }
  0x16   :  { %346 = vrot.lane.b32.xlu0 %v2425_v2, %s2378_s21  ;;  %342 = vrot.lane.b32.xlu1 %v2419_v1, %s2378_s21 }
  0x1a   :  { %299 = vrot.lane.b32.xlu1 %v2425_v2, %s2379_s0  ;;  %297 = vrot.lane.b32.xlu0 %v2417_v0, %s2379_s0 }
  0x1e   :  { %295 = vrot.lane.b32.xlu0 %v2419_v1, %s2379_s0  ;;  %250 = vrot.lane.b32.xlu1 %v2417_v0, %s2380_s22 }
  0x22   :  { %252 = vrot.lane.b32.xlu0 %v2425_v2, %s2380_s22  ;;  %248 = vrot.lane.b32.xlu1 %v2419_v1, %s2380_s22 }
  0x26   :  { %193 = vrot.lane.b32.xlu1 %v2417_v0, %s2381_s23  ;;  %191 = vrot.lane.b32.xlu0 %v2419_v1, %s2381_s23 }
  0x2a   :  { %189 = vrot.lane.b32.xlu0 %v175_v3, %s2381_s23  ;;  %144 = vrot.lane.b32.xlu1 %v2419_v1, %s2382_s24 }
  0x2e   :  { %146 = vrot.lane.b32.xlu0 %v2417_v0, %s2382_s24  ;;  %142 = vrot.lane.b32.xlu1 %v175_v3, %s2382_s24 }
  0x32   :  { %99 = vrot.lane.b32.xlu1 %v2417_v0, %s2383_s25  ;;  %97 = vrot.lane.b32.xlu0 %v2419_v1, %s2383_s25 }
  0x36   :  { %397 = vrot.lane.b32.xlu1 %v2461_v4, %s2377_s20  ;;  %395 = vrot.lane.b32.xlu0 %v2463_v5, %s2377_s20 }
  0x3a   :  { %95 = vrot.lane.b32.xlu0 %v175_v3, %s2383_s25  ;;  %50 = vrot.lane.b32.xlu1 %v2419_v1, %s2384_s26 }
  0x3e   :  { %52 = vrot.lane.b32.xlu0 %v2417_v0, %s2384_s26  ;;  %348 = vrot.lane.b32.xlu1 %v2463_v5, %s2378_s21 }
  0x42   :  { %350 = vrot.lane.b32.xlu0 %v2461_v4, %s2378_s21  ;;  %48 = vrot.lane.b32.xlu1 %v175_v3, %s2384_s26 }
  0x46   :  { %301 = vrot.lane.b32.xlu0 %v2463_v5, %s2379_s0  ;;  %303 = vrot.lane.b32.xlu1 %v2461_v4, %s2379_s0 }
  0x4a   :  { %399 = vrot.lane.b32.xlu0 %v2485_v7, %s2377_s20  ;;  %401 = vrot.lane.b32.xlu1 %v381_v8, %s2377_s20 }
  0x4e   :  { %254 = vrot.lane.b32.xlu0 %v2463_v5, %s2380_s22  ;;  %256 = vrot.lane.b32.xlu1 %v2461_v4, %s2380_s22 }
  0x52   :  { %352 = vrot.lane.b32.xlu0 %v2485_v7, %s2378_s21  ;;  %354 = vrot.lane.b32.xlu1 %v381_v8, %s2378_s21 }
  0x56   :  { %305 = vrot.lane.b32.xlu0 %v2485_v7, %s2379_s0  ;;  %307 = vrot.lane.b32.xlu1 %v381_v8, %s2379_s0 }
  0x5a   :  { %195 = vrot.lane.b32.xlu0 %v2425_v2, %s2381_s23  ;;  %197 = vrot.lane.b32.xlu1 %v2463_v5, %s2381_s23 }
  0x5e   :  { %258 = vrot.lane.b32.xlu0 %v2485_v7, %s2380_s22  ;;  %260 = vrot.lane.b32.xlu1 %v381_v8, %s2380_s22 }
  0x62   :  { %148 = vrot.lane.b32.xlu0 %v2425_v2, %s2382_s24  ;;  %150 = vrot.lane.b32.xlu1 %v2463_v5, %s2382_s24 }
  0x66   :  { %101 = vrot.lane.b32.xlu0 %v2425_v2, %s2383_s25  ;;  %103 = vrot.lane.b32.xlu1 %v2463_v5, %s2383_s25 }
  0x6a   :  { %199 = vrot.lane.b32.xlu0 %v2461_v4, %s2381_s23  ;;  %201 = vrot.lane.b32.xlu1 %v2485_v7, %s2381_s23 }
  0x6e   :  { %54 = vrot.lane.b32.xlu0 %v2425_v2, %s2384_s26  ;;  %56 = vrot.lane.b32.xlu1 %v2463_v5, %s2384_s26 }
  0x72   :  { %152 = vrot.lane.b32.xlu0 %v2461_v4, %s2382_s24  ;;  %154 = vrot.lane.b32.xlu1 %v2485_v7, %s2382_s24 }
  0x76   :  { %105 = vrot.lane.b32.xlu0 %v2461_v4, %s2383_s25  ;;  %107 = vrot.lane.b32.xlu1 %v2485_v7, %s2383_s25 }
  0x7a   :  { %58 = vrot.lane.b32.xlu0 %v2461_v4, %s2384_s26  ;;  %60 = vrot.lane.b32.xlu1 %v2485_v7, %s2384_s26 }
  0x80   :  { %v392_v9 = vpop.permute.xlu0 %391  ;;  %v390_v10 = vpop.permute.xlu1 %389 }
  0x81   :  { %v404_v14 = vsel %vm403_vm0, %v390_v10, %v392_v9 }
  0x84   :  { %v394_v11 = vpop.permute.xlu0 %393  ;;  %v345_v12 = vpop.permute.xlu1 %344 }
  0x85   :  { %v405_v13 = vsel %vm403_vm0, %v392_v9, %v394_v11 }
  0x86   :  { %495 = vmatprep.subr.mxu0 %v405_v13 }
  0x87   :  { %496 = vmatpush1.msra.mxu0 %v404_v14 }
  0x88   :  { %v2537_v15 = vpop.permute.xlu0 %346  ;;  %v343_v16 = vpop.permute.xlu1 %342 }
  0x89   :  { %v358_v17 = vsel %vm356_vm1, %v345_v12, %v2537_v15  ;;  %v357_v18 = vsel %vm356_vm1, %v343_v16, %v345_v12 }
  0x8a   :  { %497 = vmatprep.subr.mxu0 %v358_v17 }
  0x8b   :  { %498 = vmatpush1.msra.mxu0 %v357_v18 }
  0x8c   :  { %v2542_v19 = vpop.permute.xlu1 %299  ;;  %v298_v20 = vpop.permute.xlu0 %297 }
  0x8d   :  { %v311_v21 = vsel %vm309_vm2, %v298_v20, %v2542_v19 }
  0x8e   :  { %499 = vmatprep.subr.mxu0 %v311_v21 }
  0x90   :  { %v296_v22 = vpop.permute.xlu0 %295  ;;  %v251_v23 = vpop.permute.xlu1 %250 }
  0x91   :  { %v310_v24 = vsel %vm309_vm2, %v296_v22, %v298_v20 }
  0x92   :  { %500 = vmatpush1.msra.mxu0 %v310_v24 }
  0x94   :  { %v2547_v25 = vpop.permute.xlu0 %252  ;;  %v249_v26 = vpop.permute.xlu1 %248 }
  0x95   :  { %v264_v27 = vsel %vm262_vm3, %v251_v23, %v2547_v25  ;;  %v263_v28 = vsel %vm262_vm3, %v249_v26, %v251_v23 }
  0x96   :  { %501 = vmatprep.subr.mxu0 %v264_v27 }
  0x97   :  { %502 = vmatpush1.msra.mxu0 %v263_v28 }
  0x98   :  { %503 = vmatprep.subr.mxu0 %v2417_v0  ;;  %v2553_v29 = vpop.permute.xlu1 %193  ;;  %v192_v30 = vpop.permute.xlu0 %191 }
  0x99   :  { %504 = vmatpush1.msra.mxu0 %v2419_v1  ;;  %v205_v31 = vsel %vm203_vm4, %v192_v30, %v2553_v29 }
  0x9a   :  { %505 = vmatprep.subr.mxu0 %v205_v31 }
  0x9c   :  { %v190_v32 = vpop.permute.xlu0 %189  ;;  %v145_v33 = vpop.permute.xlu1 %144 }
  0x9d   :  { %v204_v34 = vsel %vm203_vm4, %v190_v32, %v192_v30 }
  0x9e   :  { %506 = vmatpush1.msra.mxu0 %v204_v34 }
  0xa0   :  { %v2559_v35 = vpop.permute.xlu0 %146  ;;  %v143_v36 = vpop.permute.xlu1 %142 }
  0xa1   :  { %v158_v37 = vsel %vm156_vm5, %v145_v33, %v2559_v35  ;;  %v157_v38 = vsel %vm156_vm5, %v143_v36, %v145_v33 }
  0xa2   :  { %507 = vmatprep.subr.mxu0 %v158_v37 }
  0xa3   :  { %508 = vmatpush1.msra.mxu0 %v157_v38 }
  0xa4   :  { %v2564_v39 = vpop.permute.xlu1 %99  ;;  %v98_v40 = vpop.permute.xlu0 %97 }
  0xa5   :  { %v111_v41 = vsel %vm109_vm6, %v98_v40, %v2564_v39 }
  0xa6   :  { %509 = vmatprep.subr.mxu0 %v111_v41 }
  0xa8   :  { %v398_v42 = vpop.permute.xlu1 %397  ;;  %v396_v43 = vpop.permute.xlu0 %395 }
  0xa9   :  { %v407_v44 = vsel %vm403_vm0, %v396_v43, %v398_v42  ;;  %v406_v45 = vsel %vm403_vm0, %v394_v11, %v396_v43 }
  0xaa   :  { %566 = vmatprep.subr.mxu1 %v407_v44 }
  0xab   :  { %567 = vmatpush1.msra.mxu1 %v406_v45 }
  0xac   :  { %v96_v46 = vpop.permute.xlu0 %95  ;;  %v51_v47 = vpop.permute.xlu1 %50 }
  0xad   :  { %v110_v48 = vsel %vm109_vm6, %v96_v46, %v98_v40 }
  0xae   :  { %510 = vmatpush1.msra.mxu0 %v110_v48 }
  0xb0   :  { %v2571_v49 = vpop.permute.xlu0 %52  ;;  %v349_v50 = vpop.permute.xlu1 %348 }
  0xb1   :  { %v64_v51 = vsel %vm62_vm7, %v51_v47, %v2571_v49  ;;  %v359_v57 = vsel %vm356_vm1, %v2537_v15, %v349_v50 }
  0xb2   :  { %511 = vmatprep.subr.mxu0 %v64_v51 }
  0xb4   :  { %v351_v52 = vpop.permute.xlu0 %350  ;;  %v49_v53 = vpop.permute.xlu1 %48 }
  0xb5   :  { %v63_v55 = vsel %vm62_vm7, %v49_v53, %v51_v47  ;;  %v360_v56 = vsel %vm356_vm1, %v349_v50, %v351_v52 }
  0xb6   :  { %512 = vmatpush1.msra.mxu0 %v63_v55  ;;  %568 = vmatprep.subr.mxu1 %v360_v56 }
  0xb7   :  { %569 = vmatpush1.msra.mxu1 %v359_v57  ;;  %2300 = vmatmul.mubr.msk.f32.vlgmr.msra.gmra.mxu0 %vm477_vm8, %v2578_v54 }
  0xb8   :  { %v302_v58 = vpop.permute.xlu0 %301  ;;  %v304_v59 = vpop.permute.xlu1 %303  ;;  %687 = vmatprep.mubr.f32.mxu0 %v2385_v6 }
  0xb9   :  { %v313_v60 = vsel %vm309_vm2, %v302_v58, %v304_v59  ;;  %v312_v61 = vsel %vm309_vm2, %v2542_v19, %v302_v58  ;;  %v695_v58 = vlaneseq }
  0xba   :  { %570 = vmatprep.subr.mxu1 %v313_v60 }
  0xbb   :  { %571 = vmatpush1.msra.mxu1 %v312_v61 }
  0xbc   :  { %v400_v62 = vpop.permute.xlu0 %399  ;;  %v402_v63 = vpop.permute.xlu1 %401 }
  0xbd   :  { %v409_v3 = vsel %vm403_vm0, %v400_v62, %v402_v63  ;;  %v408_v8 = vsel %vm403_vm0, %v398_v42, %v400_v62  ;;  %v30_v62 = vld [vmem:[%s3191_s3] sm:$0x3f] }
  0xbe   :  { %637 = vmatprep.subr.mxu0 %v409_v3 }
  0xbf   :  { %638 = vmatpush1.msra.mxu0 %v408_v8 }
  0xc0   :  { %v255_v9 = vpop.permute.xlu0 %254  ;;  %v257_v10 = vpop.permute.xlu1 %256 }
  0xc1   :  { %v266_v11 = vsel %vm262_vm3, %v255_v9, %v257_v10  ;;  %v265_v12 = vsel %vm262_vm3, %v2547_v25, %v255_v9 }
  0xc2   :  { %572 = vmatprep.subr.mxu1 %v266_v11 }
  0xc3   :  { %573 = vmatpush1.msra.mxu1 %v265_v12 }
  0xc4   :  { %v353_v13 = vpop.permute.xlu0 %352  ;;  %v355_v14 = vpop.permute.xlu1 %354  ;;  %574 = vmatprep.subr.mxu1 %v2463_v5 }
  0xc5   :  { %v362_v15 = vsel %vm356_vm1, %v353_v13, %v355_v14  ;;  %v361_v16 = vsel %vm356_vm1, %v351_v52, %v353_v13  ;;  %575 = vmatpush1.msra.mxu1 %v2425_v2 }
  0xc6   :  { %639 = vmatprep.subr.mxu0 %v362_v15 }
  0xc7   :  { %640 = vmatpush1.msra.mxu0 %v361_v16 }
  0xc8   :  { %v306_v17 = vpop.permute.xlu0 %305  ;;  %v308_v18 = vpop.permute.xlu1 %307 }
  0xc9   :  { %v315_v19 = vsel %vm309_vm2, %v306_v17, %v308_v18  ;;  %v314_v20 = vsel %vm309_vm2, %v304_v59, %v306_v17  ;;  %v696_v59 = vshrl.u32 %v695_v58, 7 }
  0xca   :  { %641 = vmatprep.subr.mxu0 %v315_v19 }
  0xcb   :  { %642 = vmatpush1.msra.mxu0 %v314_v20  ;;  %v697_v60 = vsub.s32 0, %v696_v59  ;;  %v701_v61 = vsub.s32 1, %v696_v59  ;;  %v705_v3 = vsub.s32 2, %v696_v59  ;;  %v709_v12 = vsub.s32 3, %v696_v59 }
  0xcc   :  { %v196_v21 = vpop.permute.xlu0 %195  ;;  %v198_v22 = vpop.permute.xlu1 %197 }
  0xcd   :  { %v207_v23 = vsel %vm203_vm4, %v196_v21, %v198_v22  ;;  %v206_v24 = vsel %vm203_vm4, %v2553_v29, %v196_v21  ;;  %v2636_v8 = vrot.slane %v30_v62, %v697_v60  ;;  %v2638_v9 = vrot.slane %v30_v62, %v701_v61 }
  0xce   :  { %576 = vmatprep.subr.mxu1 %v207_v23  ;;  %v2642_v11 = vrot.slane %v30_v62, %v705_v3  ;;  %v2652_v17 = vrot.slane %v30_v62, %v709_v12  ;;  %v713_v21 = vsub.s32 4, %v696_v59 }
  0xcf   :  { %577 = vmatpush1.msra.mxu1 %v206_v24 }
  0xd0   :  { %v259_v25 = vpop.permute.xlu0 %258  ;;  %v261_v26 = vpop.permute.xlu1 %260 }
  0xd1   :  { %v268_v27 = vsel %vm262_vm3, %v259_v25, %v261_v26  ;;  %v267_v28 = vsel %vm262_vm3, %v257_v10, %v259_v25  ;;  %v717_v25 = vsub.s32 5, %v696_v59 }
  0xd2   :  { %643 = vmatprep.subr.mxu0 %v268_v27 }
  0xd3   :  { %644 = vmatpush1.msra.mxu0 %v267_v28  ;;  %v2658_v28 = vrot.slane %v30_v62, %v713_v21 }
  0xd4   :  { %v149_v30 = vpop.permute.xlu0 %148  ;;  %v151_v31 = vpop.permute.xlu1 %150  ;;  %645 = vmatprep.subr.mxu0 %v2485_v7 }
  0xd5   :  { %v160_v32 = vsel %vm156_vm5, %v149_v30, %v151_v31  ;;  %v159_v33 = vsel %vm156_vm5, %v2559_v35, %v149_v30  ;;  %646 = vmatpush1.msra.mxu0 %v2461_v4 }
  0xd6   :  { %578 = vmatprep.subr.mxu1 %v160_v32  ;;  %v2660_v32 = vrot.slane %v30_v62, %v717_v25 }
  0xd7   :  { %579 = vmatpush1.msra.mxu1 %v159_v33 }
  0xd8   :  { %v102_v29 = vpop.permute.xlu0 %101  ;;  %v104_v34 = vpop.permute.xlu1 %103 }
  0xd9   :  { %v113_v36 = vsel %vm109_vm6, %v102_v29, %v104_v34  ;;  %v112_v37 = vsel %vm109_vm6, %v2564_v39, %v102_v29 }
  0xda   :  { %580 = vmatprep.subr.mxu1 %v113_v36 }
  0xdb   :  { %581 = vmatpush1.msra.mxu1 %v112_v37 }
  0xdc   :  { %v200_v38 = vpop.permute.xlu0 %199  ;;  %v202_v40 = vpop.permute.xlu1 %201 }
  0xdd   :  { %v209_v41 = vsel %vm203_vm4, %v200_v38, %v202_v40  ;;  %v208_v42 = vsel %vm203_vm4, %v198_v22, %v200_v38 }
  0xde   :  { %647 = vmatprep.subr.mxu0 %v209_v41 }
  0xdf   :  { %648 = vmatpush1.msra.mxu0 %v208_v42 }
  0xe0   :  { %v55_v35 = vpop.permute.xlu0 %54  ;;  %v57_v43 = vpop.permute.xlu1 %56 }
  0xe1   :  { %v66_v44 = vsel %vm62_vm7, %v55_v35, %v57_v43  ;;  %v65_v45 = vsel %vm62_vm7, %v2571_v49, %v55_v35 }
  0xe2   :  { %582 = vmatprep.subr.mxu1 %v66_v44 }
  0xe3   :  { %583 = vmatpush1.msra.mxu1 %v65_v45  ;;  %v2386_v45 = vmov 0  }
  0xe4   :  { %v153_v39 = vpop.permute.xlu0 %152  ;;  %2301 = vmatmul.mubr.msk.f32.vlgmr.msra.gmra.mxu1 %vm477_vm8, %v2578_v54  ;;  %v155_v46 = vpop.permute.xlu1 %154  ;;  %2322 = vset.pattern.permute.xlu1 %v2386_v45 }
  0xe5   :  { %v162_v47 = vsel %vm156_vm5, %v153_v39, %v155_v46  ;;  %v161_v48 = vsel %vm156_vm5, %v151_v31, %v153_v39  ;;  %1319 = vmatprep.mubr.f32.mxu1 %v2385_v6 }
  0xe6   :  { %649 = vmatprep.subr.mxu0 %v162_v47 }
  0xe7   :  { %650 = vmatpush1.msra.mxu0 %v161_v48 }
  0xe8   :  { %v106_v50 = vpop.permute.xlu0 %105  ;;  %v108_v51 = vpop.permute.xlu1 %107 }
  0xe9   :  { %v115_v52 = vsel %vm109_vm6, %v106_v50, %v108_v51  ;;  %v114_v49 = vsel %vm109_vm6, %v104_v34, %v106_v50 }
  0xea   :  { %651 = vmatprep.subr.mxu0 %v115_v52 }
  0xeb   :  { %652 = vmatpush1.msra.mxu0 %v114_v49 }
  0xec   :  { %v59_v53 = vpop.permute.xlu0 %58  ;;  %v61_v55 = vpop.permute.xlu1 %60 }
  0xed   :  { %v68_v56 = vsel %vm62_vm7, %v59_v53, %v61_v55  ;;  %v67_v57 = vsel %vm62_vm7, %v57_v43, %v59_v53  ;;  %v2387_v53 = vmov 1   ;;  %v2674_v55 = vld [vmem:[%s3190_s2] sm:$0xff] }
  0xee   :  { %653 = vmatprep.subr.mxu0 %v68_v56  ;;  %2323 = vset.pattern.permute.xlu0 %v2387_v53 }
  0xef   :  { %654 = vmatpush1.msra.mxu0 %v67_v57 }
  0xf0   :  { %2302 = vmatmul.mubr.msk.f32.vlgmr.msra.gmra.mxu0 %vm477_vm8, %v2578_v54 }
  0xf1   :  { %1390 = vmatprep.mubr.f32.mxu0 %v2385_v6 }
 0x177   :  { %v2634_v63 = vpop.f32.mrf.mxu0 }
 0x178   :  { %v725_v14 = vmul.f32 %v2636_v8, %v2634_v63 }
 0x179   :  { %v2640_v10 = vpop.f32.mrf.mxu0 }
 0x17a   :  { %v726_v15 = vmul.f32 %v2638_v9, %v2640_v10  ;;  %v738_v19 = vmul.f32 %v725_v14, %v725_v14 }
 0x17c   :  { %v739_v20 = vmul.f32 %v726_v15, %v726_v15  ;;  %v731_v22 = vadd.f32 %v726_v15, %v725_v14 }
 0x17e   :  { %v744_v26 = vadd.f32 %v739_v20, %v738_v19 }
 0x1a4   :  { %v2644_v13 = vpop.f32.mrf.mxu1 }
 0x1a5   :  { %v727_v16 = vmul.f32 %v2642_v11, %v2644_v13 }
 0x1a6   :  { %v2654_v18 = vpop.f32.mrf.mxu1 }
 0x1a7   :  { %v740_v23 = vmul.f32 %v727_v16, %v727_v16  ;;  %v728_v24 = vmul.f32 %v2652_v17, %v2654_v18  ;;  %v732_v27 = vadd.f32 %v731_v22, %v727_v16 }
 0x1a9   :  { %v745_v30 = vadd.f32 %v744_v26, %v740_v23  ;;  %v741_v31 = vmul.f32 %v728_v24, %v728_v24  ;;  %v733_v29 = vadd.f32 %v732_v27, %v728_v24 }
 0x1ab   :  { %v746_v41 = vadd.f32 %v745_v30, %v741_v31 }
 0x1b0   :  { %v2662_v33 = vpop.f32.mrf.mxu0 }
 0x1b1   :  { %v729_v34 = vmul.f32 %v2658_v28, %v2662_v33 }
 0x1b2   :  { %v2666_v36 = vpop.f32.mrf.mxu0 }
 0x1b3   :  { %v742_v37 = vmul.f32 %v729_v34, %v729_v34  ;;  %v730_v38 = vmul.f32 %v2660_v32, %v2666_v36  ;;  %v734_v40 = vadd.f32 %v733_v29, %v729_v34 }
 0x1b5   :  { %v735_v42 = vadd.f32 %v734_v40, %v730_v38  ;;  %v743_v35 = vmul.f32 %v730_v38, %v730_v38  ;;  %v747_v43 = vadd.f32 %v746_v41, %v742_v37 }
 0x1b7   :  { %736 = vadd.xlane.f32.xlu0 %v735_v42  ;;  %v748_v44 = vadd.f32 %v747_v43, %v743_v35 }
 0x1b9   :  { %749 = vadd.xlane.f32.xlu1 %v748_v44 }
 0x240   :  { %v737_v39 = vpop.xlane.xlu0 %736 }
 0x241   :  { %v751_v46 = vmul.f32 0.001953125, %v737_v39 }
 0x242   :  { %v750_v47 = vpop.xlane.xlu1 %749 }
 0x243   :  { %v753_v48 = vmul.f32 %v751_v46, %v751_v46  ;;  %v752_v50 = vmul.f32 0.001953125, %v750_v47 }
 0x245   :  { %v754_v51 = vsub.f32 %v752_v50, %v753_v48 }
 0x247   :  { %v755_v52 = vmax.f32 %v754_v51, 0.0 }
 0x249   :  { %v756_v49 = vadd.f32 1e-05, %v755_v52 }
 0x24b   :  { %2325 = vrsqrt.f32 %v756_v49 }
 0x258   :  { %v2326_v56 = vpop.eup %2325 }
 0x259   :  { %v758_v57 = vmul.f32 %v2326_v56, %v2674_v55 }
 0x25b   :  { %767 = vperm.xlu1 %2322, %v758_v57   ;;  %v759_v58 = vmul.f32 %v758_v57, %v751_v46 }
 0x25d   :  { %761 = vrot.lane.b32.xlu0 %v759_v58, %s2381_s23 }
 0x25f   :  { %923 = vrot.lane.b32.xlu1 %v2385_v6, %s2382_s24 }
 0x263   :  { %831 = vrot.lane.b32.xlu1 %v2385_v6, %s2384_s26 }
 0x267   :  { %1177 = vrot.lane.b32.xlu1 %v2385_v6, %s2377_s20 }
 0x26b   :  { %1131 = vrot.lane.b32.xlu1 %v2385_v6, %s2378_s21 }
 0x26f   :  { %1085 = vrot.lane.b32.xlu1 %v2385_v6, %s2379_s0 }
 0x273   :  { %1039 = vrot.lane.b32.xlu1 %v2385_v6, %s2380_s22 }
 0x2cf   :  { %v762_v59 = vpop.permute.xlu0 %761 }
 0x2d0   :  { %v764_v60 = vsub.f32 %v2674_v55, %v762_v59 }
 0x2d2   :  { %778 = vperm.xlu0 %2323, %v764_v60  }
 0x2d6   :  { %969 = vrot.lane.b32.xlu0 %v2385_v6, %s2381_s23  ;;  %v768_v61 = vpop.permute.xlu1 %767 }
 0x2d7   :  { %v770_v62 = vmul.f32 %v768_v61, %v2634_v63  ;;  %v771_v3 = vmul.f32 %v768_v61, %v2640_v10  ;;  %v772_v12 = vmul.f32 %v768_v61, %v2644_v13  ;;  %v774_v13 = vmul.f32 %v768_v61, %v2662_v33 }
 0x2d8   :  { %v775_v33 = vmul.f32 %v768_v61, %v2666_v36 }
 0x2da   :  { %877 = vrot.lane.b32.xlu0 %v2385_v6, %s2383_s25 }
 0x34d   :  { %v779_v14 = vpop.permute.xlu0 %778 }
 0x34e   :  { %v781_v15 = vadd.f32 %v779_v14, %v770_v62  ;;  %v782_v16 = vadd.f32 %v779_v14, %v771_v3  ;;  %v783_v19 = vadd.f32 %v779_v14, %v772_v12  ;;  %v786_v29 = vadd.f32 %v779_v14, %v775_v33 }
 0x350   :  { %v787_v20 = vmax.f32 %v781_v15, 0.0  ;;  %v788_v21 = vmax.f32 %v782_v16, 0.0  ;;  %v789_v22 = vmax.f32 %v783_v19, 0.0  ;;  %v792_v37 = vmax.f32 %v786_v29, 0.0 }
 0x351   :  { %v970_v35 = vpop.permute.xlu0 %969 }
 0x352   :  { %v793_v23 = vmul.f32 %v787_v20, %v2636_v8  ;;  %v794_v24 = vmul.f32 %v788_v21, %v2638_v9  ;;  %v795_v25 = vmul.f32 %v789_v22, %v2642_v11  ;;  %v798_v36 = vmul.f32 %v792_v37, %v2660_v32 }
 0x354   :  { %v2702_v26 = vadd.f32 %v793_v23, %v2419_v1  ;;  %v2705_v63 = vadd.f32 %v794_v24, %v2417_v0  ;;  %v2712_v10 = vadd.f32 %v795_v25, %v2425_v2  ;;  %v773_v0 = vmul.f32 %v768_v61, %v2654_v18 }
 0x355   :  { %v785_v18 = vadd.f32 %v779_v14, %v774_v13  ;;  %v2771_v38 = vadd.f32 %v798_v36, %v2485_v7  ;;  %v878_v44 = vpop.permute.xlu0 %877 }
 0x356   :  { %1167 = vrot.lane.b32.xlu1 %v2705_v63, %s2377_s20  ;;  %1165 = vrot.lane.b32.xlu0 %v2702_v26, %s2377_s20  ;;  %v784_v1 = vadd.f32 %v779_v14, %v773_v0 }
 0x357   :  { %v791_v30 = vmax.f32 %v785_v18, 0.0 }
 0x358   :  { %v790_v2 = vmax.f32 %v784_v1, 0.0 }
 0x359   :  { %v797_v34 = vmul.f32 %v791_v30, %v2658_v28 }
 0x35a   :  { %1169 = vrot.lane.b32.xlu1 %v2712_v10, %s2377_s20  ;;  %1123 = vrot.lane.b32.xlu0 %v2712_v10, %s2378_s21  ;;  %v796_v27 = vmul.f32 %v790_v2, %v2652_v17 }
 0x35c   :  { %v2746_v31 = vadd.f32 %v796_v27, %v2463_v5  ;;  %v2759_v5 = vadd.f32 %v797_v34, %v2461_v4  ;;  %v924_v4 = vpop.permute.xlu1 %923 }
 0x35e   :  { %1121 = vrot.lane.b32.xlu1 %v2705_v63, %s2378_s21  ;;  %1075 = vrot.lane.b32.xlu0 %v2705_v63, %s2379_s0 }
 0x360   :  { %v2813_v7 = vpop.permute.xlu1 %831 }
 0x362   :  { %1119 = vrot.lane.b32.xlu1 %v2702_v26, %s2378_s21  ;;  %1073 = vrot.lane.b32.xlu0 %v2702_v26, %s2379_s0 }
 0x364   :  { %v2819_v40 = vpop.permute.xlu1 %1177 }
 0x366   :  { %1077 = vrot.lane.b32.xlu1 %v2712_v10, %s2379_s0  ;;  %1031 = vrot.lane.b32.xlu0 %v2712_v10, %s2380_s22 }
 0x368   :  { %v2825_v41 = vpop.permute.xlu1 %1131 }
 0x36a   :  { %1029 = vrot.lane.b32.xlu1 %v2705_v63, %s2380_s22  ;;  %971 = vrot.lane.b32.xlu0 %v2702_v26, %s2381_s23 }
 0x36c   :  { %v2827_v42 = vpop.permute.xlu1 %1085 }
 0x36e   :  { %1027 = vrot.lane.b32.xlu1 %v2702_v26, %s2380_s22  ;;  %927 = vrot.lane.b32.xlu0 %v2705_v63, %s2382_s24 }
 0x370   :  { %v2829_v43 = vpop.permute.xlu1 %1039 }
 0x372   :  { %973 = vrot.lane.b32.xlu1 %v2705_v63, %s2381_s23  ;;  %879 = vrot.lane.b32.xlu0 %v2702_v26, %s2383_s25 }
 0x376   :  { %925 = vrot.lane.b32.xlu1 %v2702_v26, %s2382_s24  ;;  %1171 = vrot.lane.b32.xlu0 %v2746_v31, %s2377_s20 }
 0x37a   :  { %881 = vrot.lane.b32.xlu1 %v2705_v63, %s2383_s25  ;;  %835 = vrot.lane.b32.xlu0 %v2705_v63, %s2384_s26 }
 0x37e   :  { %1173 = vrot.lane.b32.xlu1 %v2759_v5, %s2377_s20  ;;  %1127 = vrot.lane.b32.xlu0 %v2759_v5, %s2378_s21 }
 0x382   :  { %833 = vrot.lane.b32.xlu1 %v2702_v26, %s2384_s26  ;;  %1079 = vrot.lane.b32.xlu0 %v2746_v31, %s2379_s0 }
 0x386   :  { %1125 = vrot.lane.b32.xlu1 %v2746_v31, %s2378_s21  ;;  %1175 = vrot.lane.b32.xlu0 %v2771_v38, %s2377_s20 }
 0x38a   :  { %1081 = vrot.lane.b32.xlu1 %v2759_v5, %s2379_s0  ;;  %1033 = vrot.lane.b32.xlu0 %v2746_v31, %s2380_s22 }
 0x38e   :  { %1035 = vrot.lane.b32.xlu1 %v2759_v5, %s2380_s22  ;;  %1129 = vrot.lane.b32.xlu0 %v2771_v38, %s2378_s21 }
 0x392   :  { %977 = vrot.lane.b32.xlu1 %v2746_v31, %s2381_s23  ;;  %1083 = vrot.lane.b32.xlu0 %v2771_v38, %s2379_s0 }
 0x396   :  { %931 = vrot.lane.b32.xlu1 %v2746_v31, %s2382_s24  ;;  %975 = vrot.lane.b32.xlu0 %v2712_v10, %s2381_s23 }
 0x39a   :  { %885 = vrot.lane.b32.xlu1 %v2746_v31, %s2383_s25  ;;  %1037 = vrot.lane.b32.xlu0 %v2771_v38, %s2380_s22 }
 0x39e   :  { %981 = vrot.lane.b32.xlu1 %v2771_v38, %s2381_s23  ;;  %929 = vrot.lane.b32.xlu0 %v2712_v10, %s2382_s24 }
 0x3a2   :  { %839 = vrot.lane.b32.xlu1 %v2746_v31, %s2384_s26  ;;  %883 = vrot.lane.b32.xlu0 %v2712_v10, %s2383_s25 }
 0x3a6   :  { %935 = vrot.lane.b32.xlu1 %v2771_v38, %s2382_s24  ;;  %979 = vrot.lane.b32.xlu0 %v2759_v5, %s2381_s23 }
 0x3aa   :  { %889 = vrot.lane.b32.xlu1 %v2771_v38, %s2383_s25  ;;  %837 = vrot.lane.b32.xlu0 %v2712_v10, %s2384_s26 }
 0x3ae   :  { %843 = vrot.lane.b32.xlu1 %v2771_v38, %s2384_s26  ;;  %933 = vrot.lane.b32.xlu0 %v2759_v5, %s2382_s24 }
 0x3b2   :  { %887 = vrot.lane.b32.xlu0 %v2759_v5, %s2383_s25 }
 0x3b6   :  { %841 = vrot.lane.b32.xlu0 %v2759_v5, %s2384_s26 }
 0x3c8   :  { %v1168_v45 = vpop.permute.xlu1 %1167  ;;  %v1166_v39 = vpop.permute.xlu0 %1165 }
 0x3c9   :  { %v1179_v50 = vsel %vm403_vm0, %v1166_v39, %v1168_v45 }
 0x3cc   :  { %v1170_v46 = vpop.permute.xlu1 %1169  ;;  %v2831_v47 = vpop.permute.xlu0 %1123 }
 0x3cd   :  { %v1180_v48 = vsel %vm403_vm0, %v1168_v45, %v1170_v46 }
 0x3ce   :  { %1269 = vmatprep.subr.mxu1 %v1180_v48 }
 0x3cf   :  { %1270 = vmatpush1.msra.mxu1 %v1179_v50 }
 0x3d0   :  { %v1122_v51 = vpop.permute.xlu1 %1121  ;;  %v1076_v52 = vpop.permute.xlu0 %1075 }
 0x3d1   :  { %v1134_v49 = vsel %vm356_vm1, %v1122_v51, %v2831_v47 }
 0x3d2   :  { %1271 = vmatprep.subr.mxu1 %v1134_v49 }
 0x3d4   :  { %v1120_v56 = vpop.permute.xlu1 %1119  ;;  %v1074_v57 = vpop.permute.xlu0 %1073 }
 0x3d5   :  { %v1133_v58 = vsel %vm356_vm1, %v1120_v56, %v1122_v51  ;;  %v1087_v62 = vsel %vm309_vm2, %v1074_v57, %v1076_v52 }
 0x3d6   :  { %1272 = vmatpush1.msra.mxu1 %v1133_v58 }
 0x3d8   :  { %v1078_v59 = vpop.permute.xlu1 %1077  ;;  %v2838_v60 = vpop.permute.xlu0 %1031 }
 0x3d9   :  { %v1088_v61 = vsel %vm309_vm2, %v1076_v52, %v1078_v59 }
 0x3da   :  { %1273 = vmatprep.subr.mxu1 %v1088_v61 }
 0x3db   :  { %1274 = vmatpush1.msra.mxu1 %v1087_v62 }
 0x3dc   :  { %v1030_v3 = vpop.permute.xlu1 %1029  ;;  %v972_v12 = vpop.permute.xlu0 %971 }
 0x3dd   :  { %v1042_v14 = vsel %vm262_vm3, %v1030_v3, %v2838_v60  ;;  %v983_v23 = vsel %vm203_vm4, %v970_v35, %v972_v12 }
 0x3de   :  { %1275 = vmatprep.subr.mxu1 %v1042_v14 }
 0x3e0   :  { %v1028_v15 = vpop.permute.xlu1 %1027  ;;  %v2844_v16 = vpop.permute.xlu0 %927 }
 0x3e1   :  { %v1041_v19 = vsel %vm262_vm3, %v1028_v15, %v1030_v3 }
 0x3e2   :  { %1276 = vmatpush1.msra.mxu1 %v1041_v19 }
 0x3e3   :  { %1277 = vmatprep.subr.mxu1 %v2705_v63 }
 0x3e4   :  { %v2848_v20 = vpop.permute.xlu1 %973  ;;  %1278 = vmatpush1.msra.mxu1 %v2702_v26  ;;  %v880_v21 = vpop.permute.xlu0 %879 }
 0x3e5   :  { %v984_v22 = vsel %vm203_vm4, %v972_v12, %v2848_v20  ;;  %v891_v13 = vsel %vm109_vm6, %v878_v44, %v880_v21 }
 0x3e6   :  { %1279 = vmatprep.subr.mxu1 %v984_v22 }
 0x3e7   :  { %1280 = vmatpush1.msra.mxu1 %v983_v23 }
 0x3e8   :  { %v926_v24 = vpop.permute.xlu1 %925  ;;  %v1172_v25 = vpop.permute.xlu0 %1171 }
 0x3e9   :  { %v937_v0 = vsel %vm156_vm5, %v924_v4, %v926_v24  ;;  %v938_v1 = vsel %vm156_vm5, %v926_v24, %v2844_v16  ;;  %v1181_v33 = vsel %vm403_vm0, %v1170_v46, %v1172_v25 }
 0x3ea   :  { %1281 = vmatprep.subr.mxu1 %v938_v1 }
 0x3eb   :  { %1282 = vmatpush1.msra.mxu1 %v937_v0 }
 0x3ec   :  { %v2857_v63 = vpop.permute.xlu1 %881  ;;  %v2859_v26 = vpop.permute.xlu0 %835 }
 0x3ed   :  { %v892_v2 = vsel %vm109_vm6, %v880_v21, %v2857_v63 }
 0x3ee   :  { %1283 = vmatprep.subr.mxu1 %v892_v2 }
 0x3ef   :  { %1284 = vmatpush1.msra.mxu1 %v891_v13 }
 0x3f0   :  { %v1174_v18 = vpop.permute.xlu1 %1173  ;;  %v1128_v27 = vpop.permute.xlu0 %1127 }
 0x3f1   :  { %v1182_v30 = vsel %vm403_vm0, %v1172_v25, %v1174_v18 }
 0x3f2   :  { %1340 = vmatprep.subr.mxu0 %v1182_v30 }
 0x3f3   :  { %1341 = vmatpush1.msra.mxu0 %v1181_v33 }
 0x3f4   :  { %v834_v29 = vpop.permute.xlu1 %833  ;;  %v1080_v34 = vpop.permute.xlu0 %1079 }
 0x3f5   :  { %v845_v37 = vsel %vm62_vm7, %v2813_v7, %v834_v29  ;;  %v846_v36 = vsel %vm62_vm7, %v834_v29, %v2859_v26  ;;  %v1089_v51 = vsel %vm309_vm2, %v1078_v59, %v1080_v34 }
 0x3f6   :  { %1285 = vmatprep.subr.mxu1 %v846_v36 }
 0x3f7   :  { %1286 = vmatpush1.msra.mxu1 %v845_v37 }
 0x3f8   :  { %v1126_v4 = vpop.permute.xlu1 %1125  ;;  %v1176_v35 = vpop.permute.xlu0 %1175  ;;  %2303 = vmatmul.mubr.msk.f32.vlgmr.msra.gmra.mxu1 %vm477_vm8, %v2578_v54 }
 0x3f9   :  { %v1135_v44 = vsel %vm356_vm1, %v2831_v47, %v1126_v4  ;;  %v1183_v45 = vsel %vm403_vm0, %v1174_v18, %v1176_v35  ;;  %v1136_v39 = vsel %vm356_vm1, %v1126_v4, %v1128_v27  ;;  %v1184_v7 = vsel %vm403_vm0, %v1176_v35, %v2819_v40  ;;  %1461 = vmatprep.mubr.f32.mxu1 %v2385_v6 }
 0x3fa   :  { %1342 = vmatprep.subr.mxu0 %v1136_v39  ;;  %1411 = vmatprep.subr.mxu1 %v1184_v7 }
 0x3fb   :  { %1343 = vmatpush1.msra.mxu0 %v1135_v44  ;;  %1412 = vmatpush1.msra.mxu1 %v1183_v45 }
 0x3fc   :  { %v1082_v46 = vpop.permute.xlu1 %1081  ;;  %v1034_v48 = vpop.permute.xlu0 %1033 }
 0x3fd   :  { %v1090_v50 = vsel %vm309_vm2, %v1080_v34, %v1082_v46  ;;  %v1043_v57 = vsel %vm262_vm3, %v2838_v60, %v1034_v48 }
 0x3fe   :  { %1344 = vmatprep.subr.mxu0 %v1090_v50 }
 0x3ff   :  { %1345 = vmatpush1.msra.mxu0 %v1089_v51 }
 0x400   :  { %v1036_v47 = vpop.permute.xlu1 %1035  ;;  %v1130_v52 = vpop.permute.xlu0 %1129 }
 0x401   :  { %v1137_v49 = vsel %vm356_vm1, %v1128_v27, %v1130_v52  ;;  %v1044_v40 = vsel %vm262_vm3, %v1034_v48, %v1036_v47  ;;  %v1138_v56 = vsel %vm356_vm1, %v1130_v52, %v2825_v41 }
 0x402   :  { %1346 = vmatprep.subr.mxu0 %v1044_v40  ;;  %1413 = vmatprep.subr.mxu1 %v1138_v56 }
 0x403   :  { %1347 = vmatpush1.msra.mxu0 %v1043_v57  ;;  %1414 = vmatpush1.msra.mxu1 %v1137_v49 }
 0x404   :  { %v978_v58 = vpop.permute.xlu1 %977  ;;  %1348 = vmatprep.subr.mxu0 %v2746_v31  ;;  %v1084_v59 = vpop.permute.xlu0 %1083 }
 0x405   :  { %v1091_v61 = vsel %vm309_vm2, %v1082_v46, %v1084_v59  ;;  %1349 = vmatpush1.msra.mxu0 %v2712_v10  ;;  %v1092_v62 = vsel %vm309_vm2, %v1084_v59, %v2827_v42 }
 0x406   :  { %1415 = vmatprep.subr.mxu1 %v1092_v62 }
 0x407   :  { %1416 = vmatpush1.msra.mxu1 %v1091_v61 }
 0x408   :  { %v932_v41 = vpop.permute.xlu1 %931  ;;  %v976_v3 = vpop.permute.xlu0 %975 }
 0x409   :  { %v985_v60 = vsel %vm203_vm4, %v2848_v20, %v976_v3  ;;  %v986_v12 = vsel %vm203_vm4, %v976_v3, %v978_v58 }
 0x40a   :  { %1350 = vmatprep.subr.mxu0 %v986_v12 }
 0x40b   :  { %1351 = vmatpush1.msra.mxu0 %v985_v60 }
 0x40c   :  { %v886_v31 = vpop.permute.xlu1 %885  ;;  %v1038_v14 = vpop.permute.xlu0 %1037 }
 0x40d   :  { %v1045_v15 = vsel %vm262_vm3, %v1036_v47, %v1038_v14  ;;  %v1046_v10 = vsel %vm262_vm3, %v1038_v14, %v2829_v43 }
 0x40e   :  { %1417 = vmatprep.subr.mxu1 %v1046_v10 }
 0x40f   :  { %1418 = vmatpush1.msra.mxu1 %v1045_v15 }
 0x410   :  { %v982_v42 = vpop.permute.xlu1 %981  ;;  %1419 = vmatprep.subr.mxu1 %v2771_v38  ;;  %v930_v19 = vpop.permute.xlu0 %929 }
 0x411   :  { %v939_v20 = vsel %vm156_vm5, %v2844_v16, %v930_v19  ;;  %1420 = vmatpush1.msra.mxu1 %v2759_v5  ;;  %v940_v21 = vsel %vm156_vm5, %v930_v19, %v932_v41 }
 0x412   :  { %1352 = vmatprep.subr.mxu0 %v940_v21 }
 0x413   :  { %1353 = vmatpush1.msra.mxu0 %v939_v20 }
 0x414   :  { %v884_v22 = vpop.permute.xlu0 %883  ;;  %v840_v24 = vpop.permute.xlu1 %839 }
 0x415   :  { %v893_v23 = vsel %vm109_vm6, %v2857_v63, %v884_v22  ;;  %v894_v43 = vsel %vm109_vm6, %v884_v22, %v886_v31 }
 0x416   :  { %1354 = vmatprep.subr.mxu0 %v894_v43 }
 0x417   :  { %1355 = vmatpush1.msra.mxu0 %v893_v23 }
 0x418   :  { %v980_v38 = vpop.permute.xlu0 %979  ;;  %v936_v5 = vpop.permute.xlu1 %935 }
 0x419   :  { %v987_v25 = vsel %vm203_vm4, %v978_v58, %v980_v38  ;;  %v988_v16 = vsel %vm203_vm4, %v980_v38, %v982_v42 }
 0x41a   :  { %1421 = vmatprep.subr.mxu1 %v988_v16 }
 0x41b   :  { %1422 = vmatpush1.msra.mxu1 %v987_v25 }
 0x41c   :  { %v838_v0 = vpop.permute.xlu0 %837  ;;  %v890_v27 = vpop.permute.xlu1 %889 }
 0x41d   :  { %v847_v1 = vsel %vm62_vm7, %v2859_v26, %v838_v0  ;;  %v848_v2 = vsel %vm62_vm7, %v838_v0, %v840_v24 }
 0x41e   :  { %1356 = vmatprep.subr.mxu0 %v848_v2 }
 0x41f   :  { %1357 = vmatpush1.msra.mxu0 %v847_v1 }
 0x420   :  { %2304 = vmatmul.mubr.msk.f32.vlgmr.msra.gmra.mxu0 %vm477_vm8, %v2578_v54  ;;  %v934_v63 = vpop.permute.xlu0 %933  ;;  %v844_v29 = vpop.permute.xlu1 %843 }
 0x421   :  { %v941_v13 = vsel %vm156_vm5, %v932_v41, %v934_v63  ;;  %v942_v18 = vsel %vm156_vm5, %v934_v63, %v936_v5  ;;  %2062 = vmatprep.mubr.f32.mxu0 %v2385_v6 }
 0x422   :  { %1423 = vmatprep.subr.mxu1 %v942_v18 }
 0x423   :  { %1424 = vmatpush1.msra.mxu1 %v941_v13 }
 0x424   :  { %v888_v30 = vpop.permute.xlu0 %887 }
 0x425   :  { %v895_v26 = vsel %vm109_vm6, %v886_v31, %v888_v30  ;;  %v896_v33 = vsel %vm109_vm6, %v888_v30, %v890_v27 }
 0x426   :  { %1425 = vmatprep.subr.mxu1 %v896_v33 }
 0x427   :  { %1426 = vmatpush1.msra.mxu1 %v895_v26 }
 0x428   :  { %v842_v34 = vpop.permute.xlu0 %841 }
 0x429   :  { %v849_v37 = vsel %vm62_vm7, %v840_v24, %v842_v34  ;;  %v850_v36 = vsel %vm62_vm7, %v842_v34, %v844_v29 }
 0x42a   :  { %1427 = vmatprep.subr.mxu1 %v850_v36  ;;  %v1544_v36 = vld [vmem:[#allocation4 + $0x18] sm:$0xff] }
 0x42b   :  { %1428 = vmatpush1.msra.mxu1 %v849_v37  ;;  %v1543_v37 = vld [vmem:[#allocation4 + $0x10] sm:$0xff] }
 0x42c   :  { %2305 = vmatmul.mubr.msk.f32.vlgmr.msra.gmra.mxu1 %vm477_vm8, %v2578_v54 }
 0x42d   :  { %2133 = vmatprep.mubr.f32.mxu1 %v2385_v6 }
 0x4b8   :  { %v1321_v4 = vpop.f32.mrf.mxu1 }
 0x4b9   :  { %v1468_v45 = vmul.f32 %v1321_v4, %v2636_v8 }
 0x4ba   :  { %v1323_v35 = vpop.f32.mrf.mxu1 }
 0x4bb   :  { %v1469_v39 = vmul.f32 %v1323_v35, %v2638_v9  ;;  %v1481_v48 = vmul.f32 %v1468_v45, %v1468_v45 }
 0x4bd   :  { %v1482_v50 = vmul.f32 %v1469_v39, %v1469_v39  ;;  %v1474_v51 = vadd.f32 %v1469_v39, %v1468_v45 }
 0x4bf   :  { %v1487_v52 = vadd.f32 %v1482_v50, %v1481_v48 }
 0x4e0   :  { %v1392_v44 = vpop.f32.mrf.mxu0 }
 0x4e1   :  { %v1470_v7 = vmul.f32 %v1392_v44, %v2642_v11 }
 0x4e2   :  { %v2926_v46 = vpop.f32.mrf.mxu0 }
 0x4e3   :  { %v1483_v47 = vmul.f32 %v1470_v7, %v1470_v7  ;;  %v1471_v54 = vmul.f32 %v2926_v46, %v2652_v17  ;;  %v1475_v49 = vadd.f32 %v1474_v51, %v1470_v7 }
 0x4e5   :  { %v1488_v40 = vadd.f32 %v1487_v52, %v1483_v47  ;;  %v1484_v56 = vmul.f32 %v1471_v54, %v1471_v54  ;;  %v1476_v58 = vadd.f32 %v1475_v49, %v1471_v54 }
 0x4e7   :  { %v1489_v62 = vadd.f32 %v1488_v40, %v1484_v56  ;;  %v1545_v56 = vld [vmem:[#allocation4 + $0x20] sm:$0xff] }
 0x4ec   :  { %v2930_v57 = vpop.f32.mrf.mxu1 }
 0x4ed   :  { %v1472_v59 = vmul.f32 %v2930_v57, %v2658_v28 }
 0x4ee   :  { %v2934_v61 = vpop.f32.mrf.mxu1 }
 0x4ef   :  { %v1477_v41 = vadd.f32 %v1476_v58, %v1472_v59  ;;  %v1485_v3 = vmul.f32 %v1472_v59, %v1472_v59  ;;  %v1473_v60 = vmul.f32 %v2934_v61, %v2660_v32 }
 0x4f1   :  { %v1490_v12 = vadd.f32 %v1489_v62, %v1485_v3  ;;  %v1478_v31 = vadd.f32 %v1477_v41, %v1473_v60  ;;  %v1486_v14 = vmul.f32 %v1473_v60, %v1473_v60  ;;  %v1547_v60 = vld [vmem:[#allocation4 + $0x30] sm:$0xff] }
 0x4f3   :  { %1479 = vadd.xlane.f32.xlu0 %v1478_v31  ;;  %v1491_v15 = vadd.f32 %v1490_v12, %v1486_v14 }
 0x4f5   :  { %1492 = vadd.xlane.f32.xlu1 %v1491_v15 }
 0x57c   :  { %v1480_v10 = vpop.xlane.xlu0 %1479 }
 0x57d   :  { %v1494_v42 = vmul.f32 0.001953125, %v1480_v10 }
 0x57e   :  { %v1493_v19 = vpop.xlane.xlu1 %1492 }
 0x57f   :  { %v1496_v20 = vmul.f32 %v1494_v42, %v1494_v42  ;;  %v1495_v21 = vmul.f32 0.001953125, %v1493_v19 }
 0x581   :  { %v1497_v22 = vsub.f32 %v1495_v21, %v1496_v20 }
 0x583   :  { %v1498_v23 = vmax.f32 %v1497_v22, 0.0 }
 0x585   :  { %v1499_v43 = vadd.f32 1e-05, %v1498_v23 }
 0x587   :  { %2327 = vrsqrt.f32 %v1499_v43 }
 0x594   :  { %v2328_v24 = vpop.eup %2327 }
 0x595   :  { %v1501_v38 = vmul.f32 %v2328_v24, %v2674_v55 }
 0x597   :  { %1510 = vperm.xlu1 %2322, %v1501_v38   ;;  %v1502_v25 = vmul.f32 %v1501_v38, %v1494_v42 }
 0x599   :  { %1504 = vrot.lane.b32.xlu0 %v1502_v25, %s2381_s23 }
 0x59b   :  { %1712 = vrot.lane.b32.xlu1 %v2385_v6, %s2381_s23 }
 0x59d   :  { %1666 = vrot.lane.b32.xlu0 %v2385_v6, %s2382_s24 }
 0x59f   :  { %1620 = vrot.lane.b32.xlu1 %v2385_v6, %s2383_s25 }
 0x5a1   :  { %1574 = vrot.lane.b32.xlu0 %v2385_v6, %s2384_s26 }
 0x60b   :  { %v1505_v16 = vpop.permute.xlu0 %1504 }
 0x60c   :  { %v1507_v5 = vsub.f32 %v2674_v55, %v1505_v16 }
 0x60e   :  { %1521 = vperm.xlu0 %2323, %v1507_v5  }
 0x60f   :  { %v2957_v0 = vpop.permute.xlu0 %1666 }
 0x612   :  { %1920 = vrot.lane.b32.xlu0 %v2385_v6, %s2377_s20  ;;  %v1511_v1 = vpop.permute.xlu1 %1510 }
 0x613   :  { %v2959_v2 = vpop.permute.xlu0 %1574  ;;  %v1513_v63 = vmul.f32 %v1511_v1, %v1321_v4  ;;  %v1514_v55 = vmul.f32 %v1511_v1, %v1323_v35  ;;  %v1515_v13 = vmul.f32 %v1511_v1, %v1392_v44  ;;  %v1542_v35 = vld [vmem:[#allocation4 + $0x8] sm:$0xff]  ;;  %v1516_v50 = vmul.f32 %v1511_v1, %v2926_v46 }
 0x614   :  { %v1517_v51 = vmul.f32 %v1511_v1, %v2930_v57  ;;  %v1546_v57 = vld [vmem:[#allocation4 + $0x28] sm:$0xff]  ;;  %v1518_v62 = vmul.f32 %v1511_v1, %v2934_v61 }
 0x616   :  { %1874 = vrot.lane.b32.xlu0 %v2385_v6, %s2378_s21  ;;  %v1713_v15 = vpop.permute.xlu1 %1712 }
 0x61a   :  { %1828 = vrot.lane.b32.xlu0 %v2385_v6, %s2379_s0  ;;  %v1621_v42 = vpop.permute.xlu1 %1620 }
 0x61e   :  { %1782 = vrot.lane.b32.xlu0 %v2385_v6, %s2380_s22 }
 0x689   :  { %v1522_v18 = vpop.permute.xlu0 %1521 }
 0x68a   :  { %v1524_v27 = vadd.f32 %v1522_v18, %v1513_v63  ;;  %v1525_v30 = vadd.f32 %v1522_v18, %v1514_v55  ;;  %v1526_v26 = vadd.f32 %v1522_v18, %v1515_v13  ;;  %v1527_v47 = vadd.f32 %v1522_v18, %v1516_v50 }
 0x68b   :  { %v1528_v54 = vadd.f32 %v1522_v18, %v1517_v51  ;;  %v1529_v41 = vadd.f32 %v1522_v18, %v1518_v62  ;;  %v3123_v62 = vld [vmem:[%s3189_s1] sm:$0xff] }
 0x68c   :  { %v1530_v33 = vmax.f32 %v1524_v27, 0.0  ;;  %v1531_v29 = vmax.f32 %v1525_v30, 0.0  ;;  %v1532_v34 = vmax.f32 %v1526_v26, 0.0  ;;  %v1533_v52 = vmax.f32 %v1527_v47, 0.0 }
 0x68d   :  { %v1534_v49 = vmax.f32 %v1528_v54, 0.0  ;;  %v1535_v3 = vmax.f32 %v1529_v41, 0.0  ;;  %v3072_v31 = vpop.permute.xlu0 %1920 }
 0x68e   :  { %v1537_v45 = vmul.f32 %v1531_v29, %v2638_v9  ;;  %v1538_v39 = vmul.f32 %v1532_v34, %v2642_v11  ;;  %v1536_v7 = vmul.f32 %v1530_v33, %v2636_v8  ;;  %v1539_v46 = vmul.f32 %v1533_v52, %v2652_v17 }
 0x68f   :  { %v1540_v40 = vmul.f32 %v1534_v49, %v2658_v28  ;;  %v1541_v61 = vmul.f32 %v1535_v3, %v2660_v32 }
 0x690   :  { %v2964_v48 = vadd.f32 %v1543_v37, %v1537_v45  ;;  %v2966_v4 = vadd.f32 %v1544_v36, %v1538_v39  ;;  %v2972_v44 = vadd.f32 %v1542_v35, %v1536_v7  ;;  %v3010_v58 = vadd.f32 %v1545_v56, %v1539_v46 }
 0x691   :  { %v3012_v59 = vadd.f32 %v1546_v57, %v1540_v40  ;;  %v3032_v12 = vadd.f32 %v1547_v60, %v1541_v61  ;;  %v3078_v14 = vpop.permute.xlu0 %1874 }
 0x692   :  { %1912 = vrot.lane.b32.xlu0 %v2966_v4, %s2377_s20  ;;  %1910 = vrot.lane.b32.xlu1 %v2964_v48, %s2377_s20 }
 0x695   :  { %v3082_v10 = vpop.permute.xlu0 %1828 }
 0x696   :  { %1864 = vrot.lane.b32.xlu0 %v2964_v48, %s2378_s21  ;;  %1908 = vrot.lane.b32.xlu1 %v2972_v44, %s2377_s20 }
 0x699   :  { %v3084_v19 = vpop.permute.xlu0 %1782 }
 0x69a   :  { %1862 = vrot.lane.b32.xlu0 %v2972_v44, %s2378_s21  ;;  %1866 = vrot.lane.b32.xlu1 %v2966_v4, %s2378_s21 }
 0x69e   :  { %1820 = vrot.lane.b32.xlu0 %v2966_v4, %s2379_s0  ;;  %1818 = vrot.lane.b32.xlu1 %v2964_v48, %s2379_s0 }
 0x6a2   :  { %1772 = vrot.lane.b32.xlu0 %v2964_v48, %s2380_s22  ;;  %1816 = vrot.lane.b32.xlu1 %v2972_v44, %s2379_s0 }
 0x6a6   :  { %1770 = vrot.lane.b32.xlu0 %v2972_v44, %s2380_s22  ;;  %1774 = vrot.lane.b32.xlu1 %v2966_v4, %s2380_s22 }
 0x6aa   :  { %1716 = vrot.lane.b32.xlu0 %v2964_v48, %s2381_s23  ;;  %1714 = vrot.lane.b32.xlu1 %v2972_v44, %s2381_s23 }
 0x6ae   :  { %1668 = vrot.lane.b32.xlu0 %v2972_v44, %s2382_s24  ;;  %1670 = vrot.lane.b32.xlu1 %v2964_v48, %s2382_s24 }
 0x6b2   :  { %1624 = vrot.lane.b32.xlu0 %v2964_v48, %s2383_s25  ;;  %1622 = vrot.lane.b32.xlu1 %v2972_v44, %s2383_s25 }
 0x6b6   :  { %1916 = vrot.lane.b32.xlu0 %v3012_v59, %s2377_s20  ;;  %1914 = vrot.lane.b32.xlu1 %v3010_v58, %s2377_s20 }
 0x6ba   :  { %1576 = vrot.lane.b32.xlu0 %v2972_v44, %s2384_s26  ;;  %1578 = vrot.lane.b32.xlu1 %v2964_v48, %s2384_s26 }
 0x6be   :  { %1868 = vrot.lane.b32.xlu0 %v3010_v58, %s2378_s21  ;;  %1870 = vrot.lane.b32.xlu1 %v3012_v59, %s2378_s21 }
 0x6c2   :  { %1824 = vrot.lane.b32.xlu0 %v3012_v59, %s2379_s0  ;;  %1822 = vrot.lane.b32.xlu1 %v3010_v58, %s2379_s0 }
 0x6c6   :  { %1778 = vrot.lane.b32.xlu0 %v3012_v59, %s2380_s22  ;;  %1918 = vrot.lane.b32.xlu1 %v3032_v12, %s2377_s20 }
 0x6ca   :  { %1720 = vrot.lane.b32.xlu0 %v3010_v58, %s2381_s23  ;;  %1776 = vrot.lane.b32.xlu1 %v3010_v58, %s2380_s22 }
 0x6ce   :  { %1674 = vrot.lane.b32.xlu0 %v3010_v58, %s2382_s24  ;;  %1872 = vrot.lane.b32.xlu1 %v3032_v12, %s2378_s21 }
 0x6d2   :  { %1628 = vrot.lane.b32.xlu0 %v3010_v58, %s2383_s25  ;;  %1826 = vrot.lane.b32.xlu1 %v3032_v12, %s2379_s0 }
 0x6d6   :  { %1724 = vrot.lane.b32.xlu0 %v3032_v12, %s2381_s23  ;;  %1718 = vrot.lane.b32.xlu1 %v2966_v4, %s2381_s23 }
 0x6da   :  { %1582 = vrot.lane.b32.xlu0 %v3010_v58, %s2384_s26  ;;  %1780 = vrot.lane.b32.xlu1 %v3032_v12, %s2380_s22 }
 0x6de   :  { %1678 = vrot.lane.b32.xlu0 %v3032_v12, %s2382_s24  ;;  %1672 = vrot.lane.b32.xlu1 %v2966_v4, %s2382_s24 }
 0x6e2   :  { %1632 = vrot.lane.b32.xlu0 %v3032_v12, %s2383_s25  ;;  %1626 = vrot.lane.b32.xlu1 %v2966_v4, %s2383_s25 }
 0x6e6   :  { %1586 = vrot.lane.b32.xlu0 %v3032_v12, %s2384_s26  ;;  %1722 = vrot.lane.b32.xlu1 %v3012_v59, %s2381_s23 }
 0x6ea   :  { %1580 = vrot.lane.b32.xlu1 %v2966_v4, %s2384_s26 }
 0x6ee   :  { %1676 = vrot.lane.b32.xlu1 %v3012_v59, %s2382_s24 }
 0x6f2   :  { %1630 = vrot.lane.b32.xlu1 %v3012_v59, %s2383_s25 }
 0x6f6   :  { %1584 = vrot.lane.b32.xlu1 %v3012_v59, %s2384_s26 }
 0x704   :  { %v1911_v20 = vpop.permute.xlu1 %1910  ;;  %v1913_v21 = vpop.permute.xlu0 %1912 }
 0x705   :  { %v1923_v22 = vsel %vm403_vm0, %v1911_v20, %v1913_v21 }
 0x706   :  { %2012 = vmatprep.subr.mxu0 %v1923_v22 }
 0x708   :  { %v1909_v23 = vpop.permute.xlu1 %1908  ;;  %v1865_v43 = vpop.permute.xlu0 %1864 }
 0x709   :  { %v1922_v24 = vsel %vm403_vm0, %v1909_v23, %v1911_v20 }
 0x70a   :  { %2013 = vmatpush1.msra.mxu0 %v1922_v24 }
 0x70c   :  { %v1867_v38 = vpop.permute.xlu1 %1866  ;;  %v1863_v25 = vpop.permute.xlu0 %1862 }
 0x70d   :  { %v1876_v16 = vsel %vm356_vm1, %v1863_v25, %v1865_v43  ;;  %v1877_v5 = vsel %vm356_vm1, %v1865_v43, %v1867_v38 }
 0x70e   :  { %2014 = vmatprep.subr.mxu0 %v1877_v5 }
 0x70f   :  { %2015 = vmatpush1.msra.mxu0 %v1876_v16 }
 0x710   :  { %v1819_v1 = vpop.permute.xlu1 %1818  ;;  %v1821_v63 = vpop.permute.xlu0 %1820 }
 0x711   :  { %v1831_v55 = vsel %vm309_vm2, %v1819_v1, %v1821_v63 }
 0x712   :  { %2016 = vmatprep.subr.mxu0 %v1831_v55 }
 0x714   :  { %v1817_v13 = vpop.permute.xlu1 %1816  ;;  %v1773_v18 = vpop.permute.xlu0 %1772 }
 0x715   :  { %v1830_v27 = vsel %vm309_vm2, %v1817_v13, %v1819_v1 }
 0x716   :  { %2017 = vmatpush1.msra.mxu0 %v1830_v27 }
 0x718   :  { %v1775_v30 = vpop.permute.xlu1 %1774  ;;  %v1771_v26 = vpop.permute.xlu0 %1770 }
 0x719   :  { %v1784_v33 = vsel %vm262_vm3, %v1771_v26, %v1773_v18  ;;  %v1785_v29 = vsel %vm262_vm3, %v1773_v18, %v1775_v30 }
 0x71a   :  { %2018 = vmatprep.subr.mxu0 %v1785_v29 }
 0x71b   :  { %2019 = vmatpush1.msra.mxu0 %v1784_v33 }
 0x71c   :  { %v1715_v34 = vpop.permute.xlu1 %1714  ;;  %2020 = vmatprep.subr.mxu0 %v2964_v48  ;;  %v3095_v37 = vpop.permute.xlu0 %1716 }
 0x71d   :  { %v1726_v36 = vsel %vm203_vm4, %v1713_v15, %v1715_v34  ;;  %2021 = vmatpush1.msra.mxu0 %v2972_v44  ;;  %v1727_v45 = vsel %vm203_vm4, %v1715_v34, %v3095_v37 }
 0x71e   :  { %2022 = vmatprep.subr.mxu0 %v1727_v45 }
 0x71f   :  { %2023 = vmatpush1.msra.mxu0 %v1726_v36 }
 0x720   :  { %v3101_v39 = vpop.permute.xlu1 %1670  ;;  %v1669_v7 = vpop.permute.xlu0 %1668 }
 0x721   :  { %v1680_v35 = vsel %vm156_vm5, %v2957_v0, %v1669_v7  ;;  %v1681_v48 = vsel %vm156_vm5, %v1669_v7, %v3101_v39 }
 0x722   :  { %2024 = vmatprep.subr.mxu0 %v1681_v48 }
 0x723   :  { %2025 = vmatpush1.msra.mxu0 %v1680_v35 }
 0x724   :  { %v1623_v50 = vpop.permute.xlu1 %1622  ;;  %v3107_v51 = vpop.permute.xlu0 %1624 }
 0x725   :  { %v1634_v44 = vsel %vm109_vm6, %v1621_v42, %v1623_v50  ;;  %v1635_v47 = vsel %vm109_vm6, %v1623_v50, %v3107_v51 }
 0x726   :  { %2026 = vmatprep.subr.mxu0 %v1635_v47 }
 0x727   :  { %2027 = vmatpush1.msra.mxu0 %v1634_v44 }
 0x728   :  { %v1915_v54 = vpop.permute.xlu1 %1914  ;;  %v1917_v52 = vpop.permute.xlu0 %1916 }
 0x729   :  { %v1924_v49 = vsel %vm403_vm0, %v1913_v21, %v1915_v54  ;;  %v1925_v0 = vsel %vm403_vm0, %v1915_v54, %v1917_v52 }
 0x72a   :  { %2083 = vmatprep.subr.mxu1 %v1925_v0 }
 0x72b   :  { %2084 = vmatpush1.msra.mxu1 %v1924_v49 }
 0x72c   :  { %v3114_v46 = vpop.permute.xlu1 %1578  ;;  %v1577_v40 = vpop.permute.xlu0 %1576 }
 0x72d   :  { %v1588_v56 = vsel %vm62_vm7, %v2959_v2, %v1577_v40  ;;  %v1589_v57 = vsel %vm62_vm7, %v1577_v40, %v3114_v46 }
 0x72e   :  { %2028 = vmatprep.subr.mxu0 %v1589_v57 }
 0x72f   :  { %2029 = vmatpush1.msra.mxu0 %v1588_v56 }
 0x730   :  { %v1871_v41 = vpop.permute.xlu1 %1870  ;;  %v1869_v3 = vpop.permute.xlu0 %1868  ;;  %2306 = vmatmul.mubr.msk.f32.vlgmr.msra.gmra.mxu0 %vm477_vm8, %v3123_v62 }
 0x731   :  { %v1878_v61 = vsel %vm356_vm1, %v1867_v38, %v1869_v3  ;;  %v1879_v60 = vsel %vm356_vm1, %v1869_v3, %v1871_v41  ;;  %2204 = vmatprep.mubr.f32.mxu0 %v2385_v6 }
 0x732   :  { %2085 = vmatprep.subr.mxu1 %v1879_v60 }
 0x733   :  { %2086 = vmatpush1.msra.mxu1 %v1878_v61 }
 0x734   :  { %v1823_v2 = vpop.permute.xlu1 %1822  ;;  %v1825_v15 = vpop.permute.xlu0 %1824 }
 0x735   :  { %v1832_v42 = vsel %vm309_vm2, %v1821_v63, %v1823_v2  ;;  %v1833_v20 = vsel %vm309_vm2, %v1823_v2, %v1825_v15 }
 0x736   :  { %2087 = vmatprep.subr.mxu1 %v1833_v20 }
 0x737   :  { %2088 = vmatpush1.msra.mxu1 %v1832_v42 }
 0x738   :  { %v1919_v21 = vpop.permute.xlu1 %1918  ;;  %v1779_v22 = vpop.permute.xlu0 %1778 }
 0x739   :  { %v1926_v23 = vsel %vm403_vm0, %v1917_v52, %v1919_v21  ;;  %v1927_v43 = vsel %vm403_vm0, %v1919_v21, %v3072_v31 }
 0x73a   :  { %2154 = vmatprep.subr.mxu0 %v1927_v43 }
 0x73b   :  { %2155 = vmatpush1.msra.mxu0 %v1926_v23 }
 0x73c   :  { %v1777_v6 = vpop.permute.xlu1 %1776  ;;  %v1721_v25 = vpop.permute.xlu0 %1720 }
 0x73d   :  { %v1786_v24 = vsel %vm262_vm3, %v1775_v30, %v1777_v6  ;;  %v1787_v38 = vsel %vm262_vm3, %v1777_v6, %v1779_v22 }
 0x73e   :  { %2089 = vmatprep.subr.mxu1 %v1787_v38 }
 0x73f   :  { %2090 = vmatpush1.msra.mxu1 %v1786_v24 }
 0x740   :  { %v1873_v16 = vpop.permute.xlu1 %1872  ;;  %2091 = vmatprep.subr.mxu1 %v3010_v58  ;;  %v1675_v1 = vpop.permute.xlu0 %1674 }
 0x741   :  { %v1880_v5 = vsel %vm356_vm1, %v1871_v41, %v1873_v16  ;;  %2092 = vmatpush1.msra.mxu1 %v2966_v4  ;;  %v1881_v31 = vsel %vm356_vm1, %v1873_v16, %v3078_v14 }
 0x742   :  { %2156 = vmatprep.subr.mxu0 %v1881_v31 }
 0x743   :  { %2157 = vmatpush1.msra.mxu0 %v1880_v5 }
 0x744   :  { %v1827_v63 = vpop.permute.xlu1 %1826  ;;  %v1629_v27 = vpop.permute.xlu0 %1628 }
 0x745   :  { %v1834_v55 = vsel %vm309_vm2, %v1825_v15, %v1827_v63  ;;  %v1835_v13 = vsel %vm309_vm2, %v1827_v63, %v3082_v10 }
 0x746   :  { %2158 = vmatprep.subr.mxu0 %v1835_v13 }
 0x747   :  { %2159 = vmatpush1.msra.mxu0 %v1834_v55 }
 0x748   :  { %v1719_v18 = vpop.permute.xlu1 %1718  ;;  %v1725_v10 = vpop.permute.xlu0 %1724 }
 0x749   :  { %v1728_v58 = vsel %vm203_vm4, %v3095_v37, %v1719_v18  ;;  %v1729_v4 = vsel %vm203_vm4, %v1719_v18, %v1721_v25 }
 0x74a   :  { %2093 = vmatprep.subr.mxu1 %v1729_v4 }
 0x74b   :  { %2094 = vmatpush1.msra.mxu1 %v1728_v58 }
 0x74c   :  { %v1781_v14 = vpop.permute.xlu1 %1780  ;;  %v1583_v45 = vpop.permute.xlu0 %1582 }
 0x74d   :  { %v1788_v30 = vsel %vm262_vm3, %v1779_v22, %v1781_v14  ;;  %v1789_v26 = vsel %vm262_vm3, %v1781_v14, %v3084_v19 }
 0x74e   :  { %2160 = vmatprep.subr.mxu0 %v1789_v26 }
 0x74f   :  { %2161 = vmatpush1.msra.mxu0 %v1788_v30 }
 0x750   :  { %v1673_v33 = vpop.permute.xlu1 %1672  ;;  %2162 = vmatprep.subr.mxu0 %v3032_v12 }
 0x751   :  { %v1682_v29 = vsel %vm156_vm5, %v3101_v39, %v1673_v33  ;;  %2163 = vmatpush1.msra.mxu0 %v3012_v59  ;;  %v1683_v34 = vsel %vm156_vm5, %v1673_v33, %v1675_v1  ;;  %v1679_v59 = vpop.permute.xlu0 %1678 }
 0x752   :  { %2095 = vmatprep.subr.mxu1 %v1683_v34 }
 0x753   :  { %2096 = vmatpush1.msra.mxu1 %v1682_v29 }
 0x754   :  { %v1627_v37 = vpop.permute.xlu1 %1626 }
 0x755   :  { %v1636_v36 = vsel %vm109_vm6, %v3107_v51, %v1627_v37  ;;  %v1637_v19 = vsel %vm109_vm6, %v1627_v37, %v1629_v27  ;;  %v1633_v54 = vpop.permute.xlu0 %1632 }
 0x756   :  { %2097 = vmatprep.subr.mxu1 %v1637_v19 }
 0x757   :  { %2098 = vmatpush1.msra.mxu1 %v1636_v36 }
 0x758   :  { %v1723_v7 = vpop.permute.xlu1 %1722 }
 0x759   :  { %v1730_v12 = vsel %vm203_vm4, %v1721_v25, %v1723_v7  ;;  %v1731_v39 = vsel %vm203_vm4, %v1723_v7, %v1725_v10 }
 0x75a   :  { %2164 = vmatprep.subr.mxu0 %v1731_v39 }
 0x75b   :  { %2165 = vmatpush1.msra.mxu0 %v1730_v12 }
 0x75c   :  { %v1581_v35 = vpop.permute.xlu1 %1580 }
 0x75d   :  { %v1590_v48 = vsel %vm62_vm7, %v3114_v46, %v1581_v35  ;;  %v1591_v50 = vsel %vm62_vm7, %v1581_v35, %v1583_v45  ;;  %v1587_v46 = vpop.permute.xlu0 %1586 }
 0x75e   :  { %2099 = vmatprep.subr.mxu1 %v1591_v50 }
 0x75f   :  { %2100 = vmatpush1.msra.mxu1 %v1590_v48 }
 0x760   :  { %v1677_v51 = vpop.permute.xlu1 %1676  ;;  %2307 = vmatmul.mubr.msk.f32.vlgmr.msra.gmra.mxu1 %vm477_vm8, %v3123_v62 }
 0x761   :  { %v1684_v44 = vsel %vm156_vm5, %v1675_v1, %v1677_v51  ;;  %v1685_v47 = vsel %vm156_vm5, %v1677_v51, %v1679_v59 }
 0x762   :  { %2166 = vmatprep.subr.mxu0 %v1685_v47 }
 0x763   :  { %2167 = vmatpush1.msra.mxu0 %v1684_v44 }
 0x764   :  { %v1631_v52 = vpop.permute.xlu1 %1630 }
 0x765   :  { %v1638_v49 = vsel %vm109_vm6, %v1629_v27, %v1631_v52  ;;  %v1639_v0 = vsel %vm109_vm6, %v1631_v52, %v1633_v54 }
 0x766   :  { %2168 = vmatprep.subr.mxu0 %v1639_v0 }
 0x767   :  { %2169 = vmatpush1.msra.mxu0 %v1638_v49 }
 0x768   :  { %v1585_v40 = vpop.permute.xlu1 %1584 }
 0x769   :  { %v1592_v56 = vsel %vm62_vm7, %v1583_v45, %v1585_v40  ;;  %v1593_v57 = vsel %vm62_vm7, %v1585_v40, %v1587_v46 }
 0x76a   :  { %2170 = vmatprep.subr.mxu0 %v1593_v57 }
 0x76b   :  { %2171 = vmatpush1.msra.mxu0 %v1592_v56 }
 0x76c   :  { %2308 = vmatmul.mubr.msk.f32.vlgmr.msra.gmra.mxu0 %vm477_vm8, %v3123_v62 }
 0x7f0   :  { %v2064_v41 = vpop.f32.mrf.mxu0 }
 0x7f1   :  { %v2211_v60 = vmul.f32 %v2064_v41, %v2636_v8 }
 0x7f2   :  { %v2066_v3 = vpop.f32.mrf.mxu0 }
 0x7f3   :  { %v2212_v2 = vmul.f32 %v2066_v3, %v2638_v9  ;;  %v2224_v20 = vmul.f32 %v2211_v60, %v2211_v60 }
 0x7f5   :  { %v2225_v21 = vmul.f32 %v2212_v2, %v2212_v2  ;;  %v2217_v22 = vadd.f32 %v2212_v2, %v2211_v60 }
 0x7f7   :  { %v2230_v6 = vadd.f32 %v2225_v21, %v2224_v20 }
 0x820   :  { %v2135_v61 = vpop.f32.mrf.mxu1 }
 0x821   :  { %v2213_v15 = vmul.f32 %v2135_v61, %v2642_v11 }
 0x822   :  { %v2137_v42 = vpop.f32.mrf.mxu1 }
 0x823   :  { %v2226_v23 = vmul.f32 %v2213_v15, %v2213_v15  ;;  %v2214_v43 = vmul.f32 %v2137_v42, %v2652_v17  ;;  %v2218_v24 = vadd.f32 %v2217_v22, %v2213_v15 }
 0x825   :  { %v2231_v38 = vadd.f32 %v2230_v6, %v2226_v23  ;;  %v2227_v62 = vmul.f32 %v2214_v43, %v2214_v43  ;;  %v2219_v16 = vadd.f32 %v2218_v24, %v2214_v43 }
 0x827   :  { %v2232_v31 = vadd.f32 %v2231_v38, %v2227_v62 }
 0x82c   :  { %v2206_v25 = vpop.f32.mrf.mxu0 }
 0x82d   :  { %v2215_v5 = vmul.f32 %v2206_v25, %v2658_v28 }
 0x82e   :  { %v2208_v8 = vpop.f32.mrf.mxu0 }
 0x82f   :  { %v2220_v9 = vadd.f32 %v2219_v16, %v2215_v5  ;;  %v2228_v1 = vmul.f32 %v2215_v5, %v2215_v5  ;;  %v2216_v11 = vmul.f32 %v2208_v8, %v2660_v32  ;;  %v2331_v32 = vld [vmem:[%s3190_s2] sm:$0xff]  ;;  %s2388_s2 = smov [#allocation7]  }
 0x830   :  { %s2291_s9 = sshll.u32 %s2388_s2, 4  ;;  %s2292_s9 = int_to_ptr.vmem [resolvable:$true] %s2291_s9 }
 0x831   :  { %v2233_v63 = vadd.f32 %v2232_v31, %v2228_v1  ;;  %v2221_v55 = vadd.f32 %v2220_v9, %v2216_v11  ;;  %v2229_v13 = vmul.f32 %v2216_v11, %v2216_v11  ;;  %s2352_s10 = scalar_lea.vmem %s2292_s9, 768  ;;  %p2357_p6 = scmp.lt.s32.totalorder %s2292_s9, %s2292_s9 }
 0x832   :  { %p2353_p5 = scmp.ne.s32.totalorder %s2292_s9, %s2352_s10  ;;  %p2358_p7 = scmp.lt.s32.totalorder %s2352_s10, %s2352_s10 }
 0x833   :  { %2222 = vadd.xlane.f32.xlu1 %v2221_v55  ;;  %v2234_v18 = vadd.f32 %v2233_v63, %v2229_v13 }
 0x834   :  { %p2359_p8 = por %p2358_p7, %p2357_p6 }
 0x835   :  { %2235 = vadd.xlane.f32.xlu0 %v2234_v18 }
 0x836   :  { %p2360_p9 = pnand %p2359_p8, %p2353_p5 }
 0x8bc   :  { %v2223_v17 = vpop.xlane.xlu1 %2222 }
 0x8bd   :  { %v2237_v58 = vmul.f32 0.001953125, %v2223_v17 }
 0x8be   :  { %v2236_v4 = vpop.xlane.xlu0 %2235 }
 0x8bf   :  { %v2239_v27 = vmul.f32 %v2237_v58, %v2237_v58  ;;  %v2238_v14 = vmul.f32 0.001953125, %v2236_v4 }
 0x8c1   :  { %v2240_v30 = vsub.f32 %v2238_v14, %v2239_v27 }
 0x8c3   :  { %v2241_v26 = vmax.f32 %v2240_v30, 0.0 }
 0x8c5   :  { %v2242_v28 = vadd.f32 1e-05, %v2241_v26 }
 0x8c7   :  { %2329 = vrsqrt.f32 %v2242_v28 }
 0x8d4   :  { %v2330_v10 = vpop.eup %2329 }
 0x8d5   :  { %v2244_v33 = vmul.f32 %v2331_v32, %v2330_v10 }
 0x8d7   :  { %2253 = vperm.xlu1 %2322, %v2244_v33   ;;  %v2245_v29 = vmul.f32 %v2244_v33, %v2237_v58 }
 0x8d9   :  { %2247 = vrot.lane.b32.xlu0 %v2245_v29, %s2381_s23 }
 0x8db   :  { %2324 = vset.pattern.permute.xlu1 %v2387_v53 }
 0x94b   :  { %v2248_v34 = vpop.permute.xlu0 %2247 }
 0x94c   :  { %v2250_v37 = vsub.f32 %v2331_v32, %v2248_v34 }
 0x94e   :  { %2264 = vperm.xlu1 %2324, %v2250_v37  }
 0x952   :  { %v2254_v36 = vpop.permute.xlu1 %2253 }
 0x953   :  { %v2256_v19 = vmul.f32 %v2254_v36, %v2064_v41  ;;  %v2257_v45 = vmul.f32 %v2254_v36, %v2066_v3  ;;  %v2258_v7 = vmul.f32 %v2254_v36, %v2135_v61  ;;  %v2259_v12 = vmul.f32 %v2254_v36, %v2137_v42 }
 0x954   :  { %v2260_v39 = vmul.f32 %v2254_v36, %v2206_v25  ;;  %v2261_v59 = vmul.f32 %v2254_v36, %v2208_v8 }
 0x9c9   :  { %v2265_v35 = vpop.permute.xlu1 %2264 }
 0x9ca   :  { %v2267_v48 = vadd.f32 %v2265_v35, %v2256_v19  ;;  %v2268_v50 = vadd.f32 %v2265_v35, %v2257_v45  ;;  %v2269_v51 = vadd.f32 %v2265_v35, %v2258_v7  ;;  %v2270_v44 = vadd.f32 %v2265_v35, %v2259_v12 }
 0x9cb   :  { %v2271_v47 = vadd.f32 %v2265_v35, %v2260_v39  ;;  %v2272_v54 = vadd.f32 %v2265_v35, %v2261_v59 }
 0x9cc   :  { %v2273_v53 = vmax.f32 %v2267_v48, 0.0  ;;  %v2274_v52 = vmax.f32 %v2268_v50, 0.0  ;;  %v2275_v49 = vmax.f32 %v2269_v51, 0.0  ;;  %v2276_v0 = vmax.f32 %v2270_v44, 0.0 }
 0x9cd   :  { %v2277_v46 = vmax.f32 %v2271_v47, 0.0  ;;  %v2278_v40 = vmax.f32 %v2272_v54, 0.0 }
 0x9ce   :  { %2279 = vst [vmem:[#allocation7] sm:$0xff] %v2273_v53  ;;  %2280 = vst [vmem:[#allocation7 + $0x8] sm:$0xff] %v2274_v52 }
 0x9cf   :  { %2281 = vst [vmem:[#allocation7 + $0x10] sm:$0xff] %v2275_v49  ;;  %2282 = vst [vmem:[#allocation7 + $0x18] sm:$0xff] %v2276_v0 }
 0x9d0   :  { %2283 = vst [vmem:[#allocation7 + $0x20] sm:$0xff] %v2277_v46  ;;  %2284 = vst [vmem:[#allocation7 + $0x28] sm:$0xff] %v2278_v40 }
 0x9d1   :  { %2363 = shalt.err (!%p2360_p9)
}
 0x9d2   :  { %2294 = dma.vmem_to_hbm [thread:$0]  %s2292_s9, 768, %s3192_s4, [#allocation6]  }
 0x9d3   :  { %2374 = dma.done.wait [#allocation6], 768  }
 0x9d4   :  { %2375 = vsyncadd [#allocation6], 4294966528 }
 0x9d5   :  { %2298 = vsyncpa [#allocation5], 1 }
 0x9d6   :  { %2299 = vsyncpa [#allocation6], 1 }

</bundles_post_ra>
